<compile_context>
chip_gen: v7x
topology: tpu7x:2x2x1
jax: 0.10.0
libtpu: 0.0.40
codegen_flags: <defaults>
</compile_context>

<pallas_src>
import functools

import jax
import jax.numpy as jnp
from jax import lax
from jax.experimental import pallas as pl
from jax.experimental.pallas import tpu as pltpu


# -----------------------------------------------------------------------------
# Hoisted input projection: one big (T*B, E) @ (E, 4H) bf16 matmul (plain XLA).
# -----------------------------------------------------------------------------
def input_projection(x, wx, b):
    """x: (T, B, E) f32; wx: (E, 4H) bf16; b: (1, 4H) f32 -> (T, B, 4H) f32."""
    T, B, E = x.shape
    G = wx.shape[1]
    gx = jnp.dot(x.reshape(T * B, E).astype(wx.dtype), wx,
                 preferred_element_type=jnp.float32) + b
    return gx.reshape(T, B, G)


# -----------------------------------------------------------------------------
# LSTM recurrence kernel: grid = (batch tiles [parallel], time chunks [arbitrary])
# -----------------------------------------------------------------------------
def _lstm_kernel(gx_ref, h0_ref, c0_ref, wh_ref,
                 hseq_ref, hfin_ref, cfin_ref, h_scr, c_scr, *, hidden, chunk):
    ci = pl.program_id(1)

    @pl.when(ci == 0)
    def _():
        h_scr[...] = h0_ref[...]
        c_scr[...] = c0_ref[...]

    def step(t, carry):
        h, c = carry
        gates = gx_ref[t] + jnp.dot(h.astype(wh_ref.dtype), wh_ref[...],
                                    preferred_element_type=jnp.float32)  # (LB, 4H)
        i = jax.nn.sigmoid(gates[:, 0 * hidden:1 * hidden])
        f = jax.nn.sigmoid(gates[:, 1 * hidden:2 * hidden])
        g = jnp.tanh(gates[:, 2 * hidden:3 * hidden])
        o = jax.nn.sigmoid(gates[:, 3 * hidden:4 * hidden])
        c = f * c + i * g
        h = o * jnp.tanh(c)
        hseq_ref[t] = h.astype(hseq_ref.dtype)
        return (h, c)

    h, c = lax.fori_loop(0, chunk, step, (h_scr[...], c_scr[...]), unroll=True)
    h_scr[...] = h
    c_scr[...] = c

    # Only write the final state on the last time chunk.
    @pl.when(ci == pl.num_programs(1) - 1)
    def _():
        hfin_ref[...] = h
        cfin_ref[...] = c


def lstm_layer(gx, h0, c0, wh, *, time_chunk=8, batch_block=None):
    """gx: (T, B, 4H) f32 precomputed x@Wx+b.  Returns (h_seq, h_T, c_T)."""
    T, B, G = gx.shape
    H = h0.shape[-1]
    assert G == 4 * H
    Tc = min(time_chunk, T)
    assert T % Tc == 0
    LB = B if batch_block is None else batch_block
    assert B % LB == 0
    kernel = functools.partial(_lstm_kernel, hidden=H, chunk=Tc)
    return pl.pallas_call(
        kernel,
        out_shape=(jax.ShapeDtypeStruct((T, B, H), jnp.float32),
                   jax.ShapeDtypeStruct((B, H), jnp.float32),
                   jax.ShapeDtypeStruct((B, H), jnp.float32)),
        grid_spec=pltpu.PrefetchScalarGridSpec(
            num_scalar_prefetch=0,
            grid=(B // LB, T // Tc),
            in_specs=[
                pl.BlockSpec((Tc, LB, 4 * H), lambda b, c: (c, b, 0)),
                pl.BlockSpec((LB, H), lambda b, c: (b, 0)),
                pl.BlockSpec((LB, H), lambda b, c: (b, 0)),
                pl.BlockSpec((H, 4 * H), lambda b, c: (0, 0)),
            ],
            out_specs=[
                pl.BlockSpec((Tc, LB, H), lambda b, c: (c, b, 0)),
                pl.BlockSpec((LB, H), lambda b, c: (b, 0)),
                pl.BlockSpec((LB, H), lambda b, c: (b, 0)),
            ],
            scratch_shapes=[pltpu.VMEM((LB, H), jnp.float32),
                            pltpu.VMEM((LB, H), jnp.float32)],
        ),
        compiler_params=pltpu.CompilerParams(
            dimension_semantics=("parallel", "arbitrary")),
    )(gx, h0, c0, wh)


# -----------------------------------------------------------------------------
# GlobalAttention ('general', softmax) kernel: grid over batch tiles, time-major IO
# -----------------------------------------------------------------------------
def _attn_kernel(len_ref, hdec_ref, mem_ref, wa_ref, woc_ref, woh_ref,
                 out_ref, attn_ref):
    T, Bt, H = hdec_ref.shape
    b0 = pl.program_id(0) * Bt

    h_bf = hdec_ref[...].astype(jnp.bfloat16)            # (T, Bt, H)
    hflat = h_bf.reshape(T * Bt, H)

    # Shared projections hoisted over the whole (T*Bt, H) slab (MXU-sized M).
    q = jnp.dot(hflat, wa_ref[...],
                preferred_element_type=jnp.float32).astype(jnp.bfloat16)
    q = q.reshape(T, Bt, H)
    hW = jnp.dot(hflat, woh_ref[...],
                 preferred_element_type=jnp.float32).reshape(T, Bt, H)

    # Per-batch scores / softmax / context (stays in VMEM; static small loop).
    for i in range(Bt):
        m_i = mem_ref[:, i, :].astype(jnp.bfloat16)                  # (S, H)
        q_i = q[:, i, :]                                             # (T, H)
        # scores = q_i @ m_i^T without materializing a transpose.
        scores = lax.dot_general(q_i, m_i, (((1,), (1,)), ((), ())),
                                 preferred_element_type=jnp.float32)  # (T, S)
        L = len_ref[b0 + i]
        s_idx = lax.broadcasted_iota(jnp.int32, scores.shape, 1)
        scores = jnp.where(s_idx < L, scores, -1e30)

        smax = jnp.max(scores, axis=-1, keepdims=True)
        e = jnp.exp(scores - smax)
        align = e * pl.reciprocal(jnp.sum(e, axis=-1, keepdims=True), approx=True)

        ctx = jnp.dot(align.astype(jnp.bfloat16), m_i,
                      preferred_element_type=jnp.float32)             # (T, H)
        cW = jnp.dot(ctx.astype(jnp.bfloat16), woc_ref[...],
                     preferred_element_type=jnp.float32)              # (T, H)

        out_ref[:, i, :] = jnp.tanh(cW + hW[:, i, :]).astype(out_ref.dtype)
        attn_ref[:, i, :] = align.astype(attn_ref.dtype)


def global_attention(hdec, memory_bank, memory_lengths, wa, wo_c, wo_h,
                     *, batch_block=None):
    """hdec: (T, B, H) time-major; memory_bank: (S, B, H); memory_lengths: (B,).
    Returns dec_out (T, B, H), attn (T, B, S)."""
    T, B, H = hdec.shape
    S = memory_bank.shape[0]
    Bt = B if batch_block is None else batch_block
    assert B % Bt == 0

    # Lane-dense memory / attention output: pad src dim to a multiple of 128.
    Sp = max(128, ((S + 127) // 128) * 128)
    if Sp != S:
        memory_bank = jnp.pad(memory_bank, ((0, Sp - S), (0, 0), (0, 0)))
    lengths = memory_lengths.astype(jnp.int32)

    dec, attn = pl.pallas_call(
        _attn_kernel,
        out_shape=(jax.ShapeDtypeStruct((T, B, H), jnp.float32),
                   jax.ShapeDtypeStruct((T, B, Sp), jnp.float32)),
        grid_spec=pltpu.PrefetchScalarGridSpec(
            num_scalar_prefetch=1,
            grid=(B // Bt,),
            in_specs=[
                pl.BlockSpec((T, Bt, H), lambda b, lens: (0, b, 0)),
                pl.BlockSpec((Sp, Bt, H), lambda b, lens: (0, b, 0)),
                pl.BlockSpec((H, H), lambda b, lens: (0, 0)),
                pl.BlockSpec((H, H), lambda b, lens: (0, 0)),
                pl.BlockSpec((H, H), lambda b, lens: (0, 0)),
            ],
            out_specs=[
                pl.BlockSpec((T, Bt, H), lambda b, lens: (0, b, 0)),
                pl.BlockSpec((T, Bt, Sp), lambda b, lens: (0, b, 0)),
            ],
        ),
        compiler_params=pltpu.CompilerParams(dimension_semantics=("parallel",)),
    )(lengths, hdec, memory_bank, wa, wo_c, wo_h)

    if Sp != S:
        attn = attn[:, :, :S]
    return dec, attn


# -----------------------------------------------------------------------------
# Full decoder forward (glue in plain JAX; hot paths in Pallas)
# -----------------------------------------------------------------------------
def decoder_forward(params, tgt, memory_bank, memory_lengths):
    """tgt: (T, B, 1) int32; memory_bank: (S, B, H) f32; memory_lengths: (B,) int32."""
    emb = jnp.take(params["embedding"], tgt[:, :, 0], axis=0)        # (T, B, E)

    x = emb
    finals = []
    for layer in params["lstm"]:
        gx = input_projection(x, layer["wx"], layer["b"])            # hoisted x @ Wx
        x, hT, cT = lstm_layer(gx, layer["h0"], layer["c0"], layer["wh"])
        finals.append((hT, cT))
    rnn_output = x                                                   # (T, B, H)

    dec_outs, attn = global_attention(rnn_output, memory_bank, memory_lengths,
                                      params["attn_wa"],
                                      params["attn_wo_c"], params["attn_wo_h"])
    attns = {"std": attn}                                            # (T, B, S)
    # dropout(p=0.0) is identity in eval; input_feed = dec_outs[-1][None]
    state = {"hidden": tuple(jnp.stack(z) for z in zip(*finals)),
             "input_feed": dec_outs[-1][None], "coverage": None}
    return dec_outs, attns, state


# -----------------------------------------------------------------------------
# Pure-JAX reference for verification (same bf16 matmul casting points)
# -----------------------------------------------------------------------------
def decoder_forward_ref(params, tgt, memory_bank, memory_lengths):
    emb = jnp.take(params["embedding"], tgt[:, :, 0], axis=0)
    x = emb
    for layer in params["lstm"]:
        H = layer["h0"].shape[-1]
        gx = input_projection(x, layer["wx"], layer["b"])

        def step(carry, gx_t, wh=layer["wh"], H=H):
            h, c = carry
            g = gx_t + jnp.dot(h.astype(wh.dtype), wh,
                               preferred_element_type=jnp.float32)
            i = jax.nn.sigmoid(g[:, :H])
            f = jax.nn.sigmoid(g[:, H:2 * H])
            gg = jnp.tanh(g[:, 2 * H:3 * H])
            o = jax.nn.sigmoid(g[:, 3 * H:4 * H])
            c = f * c + i * gg
            h = o * jnp.tanh(c)
            return (h, c), h

        (_, _), x = lax.scan(step, (layer["h0"], layer["c0"]), gx)

    hdec = x                                                          # (T, B, H)
    hb = jnp.transpose(hdec, (1, 0, 2)).astype(jnp.bfloat16)          # (B, T, H)
    mb = jnp.transpose(memory_bank, (1, 0, 2)).astype(jnp.bfloat16)   # (B, S, H)
    S = mb.shape[1]
    q = jnp.einsum("bth,hk->btk", hb, params["attn_wa"],
                   preferred_element_type=jnp.float32).astype(jnp.bfloat16)
    scores = jnp.einsum("bth,bsh->bts", q, mb, preferred_element_type=jnp.float32)
    mask = jnp.arange(S)[None, None, :] < memory_lengths[:, None, None]
    scores = jnp.where(mask, scores, -1e30)
    align = jax.nn.softmax(scores, axis=-1)
    ctx = jnp.einsum("bts,bsh->bth", align.astype(jnp.bfloat16), mb,
                     preferred_element_type=jnp.float32)
    out = jnp.tanh(
        jnp.einsum("bth,hk->btk", ctx.astype(jnp.bfloat16), params["attn_wo_c"],
                   preferred_element_type=jnp.float32)
        + jnp.einsum("bth,hk->btk", hb, params["attn_wo_h"],
                     preferred_element_type=jnp.float32))
    return jnp.transpose(out, (1, 0, 2)), jnp.transpose(align, (1, 0, 2))


# -----------------------------------------------------------------------------
# Deterministic parameter construction + example run
# -----------------------------------------------------------------------------
def make_params(key, vocab=64, emb_dim=128, hidden=128, num_layers=2, batch=8):
    ks = jax.random.split(key, 4 + 5 * num_layers)
    bf = jnp.bfloat16
    params = {
        "embedding": 0.1 * jax.random.normal(ks[0], (vocab, emb_dim), jnp.float32),
        "attn_wa": (0.1 * jax.random.normal(ks[1], (hidden, hidden),
                                            jnp.float32)).astype(bf),
        # split output weight (concat-free): out = tanh(ctx @ Wo_c + h @ Wo_h)
        "attn_wo_c": (0.1 * jax.random.normal(ks[2], (hidden, hidden),
                                              jnp.float32)).astype(bf),
        "attn_wo_h": (0.1 * jax.random.normal(ks[3], (hidden, hidden),
                                              jnp.float32)).astype(bf),
        "lstm": [],
    }
    in_dim = emb_dim
    for l in range(num_layers):
        kwx, kwh, kb, kh, kc = ks[4 + 5 * l: 4 + 5 * (l + 1)]
        params["lstm"].append({
            "wx": (0.1 * jax.random.normal(kwx, (in_dim, 4 * hidden),
                                           jnp.float32)).astype(bf),
            "wh": (0.1 * jax.random.normal(kwh, (hidden, 4 * hidden),
                                           jnp.float32)).astype(bf),
            "b": 0.1 * jax.random.normal(kb, (1, 4 * hidden), jnp.float32),
            "h0": 0.1 * jax.random.normal(kh, (batch, hidden), jnp.float32),
            "c0": 0.1 * jax.random.normal(kc, (batch, hidden), jnp.float32),
        })
        in_dim = hidden
    return params


if __name__ == "__main__":
    key = jax.random.PRNGKey(0)
    tgt_len, src_len, batch, hidden = 16, 128, 8, 128

    kp, kt, km, kl = jax.random.split(key, 4)
    params = make_params(kp, vocab=64, emb_dim=hidden, hidden=hidden,
                         num_layers=2, batch=batch)
    tgt = jax.random.randint(kt, (tgt_len, batch, 1), 0, 64, dtype=jnp.int32)
    memory_bank = 0.5 * jax.random.normal(km, (src_len, batch, hidden), jnp.float32)
    memory_lengths = jax.random.randint(kl, (batch,), src_len // 2, src_len + 1,
                                        dtype=jnp.int32)
    memory_lengths = memory_lengths.at[0].set(src_len)

    dec_outs, attns, state = decoder_forward(params, tgt, memory_bank, memory_lengths)
    jax.block_until_ready(dec_outs)
    jax.block_until_ready(attns["std"])

    ref_outs, ref_attn = decoder_forward_ref(params, tgt, memory_bank, memory_lengths)
    assert dec_outs.shape == (tgt_len, batch, hidden)
    assert attns["std"].shape == (tgt_len, batch, src_len)
    assert jnp.allclose(dec_outs, ref_outs, rtol=5e-3, atol=5e-3), \
        float(jnp.max(jnp.abs(dec_outs - ref_outs)))
    assert jnp.allclose(attns["std"], ref_attn, rtol=5e-3, atol=5e-3), \
        float(jnp.max(jnp.abs(attns["std"] - ref_attn)))

    print("KERNEL_OK")
</pallas_src>

<mosaic_0001>
module attributes {stable_mosaic.version = 11 : i64} {
  func.func @_lstm_kernel(%arg0: i32, %arg1: i32, %arg2: memref<8x8x512xf32, #tpu.memory_space<vmem>>, %arg3: memref<8x128xf32, #tpu.memory_space<vmem>>, %arg4: memref<8x128xf32, #tpu.memory_space<vmem>>, %arg5: memref<128x512xbf16, #tpu.memory_space<vmem>>, %arg6: memref<8x8x128xf32, #tpu.memory_space<vmem>>, %arg7: memref<8x128xf32, #tpu.memory_space<vmem>>, %arg8: memref<8x128xf32, #tpu.memory_space<vmem>>, %arg9: memref<8x128xf32, #tpu.memory_space<vmem>>, %arg10: memref<8x128xf32, #tpu.memory_space<vmem>>) attributes {dimension_semantics = [#tpu.dimension_semantics<parallel>, #tpu.dimension_semantics<arbitrary>], iteration_bounds = array<i64: 1, 2>, scalar_prefetch = 0 : i64, scratch_operands = 2 : i64, tpu.core_type = #tpu.core_type<tc>, window_params = [{transform_indices = @transform_0, window_bounds = array<i64: 8, 8, 512>}, {transform_indices = @transform_1, window_bounds = array<i64: 8, 128>}, {transform_indices = @transform_2, window_bounds = array<i64: 8, 128>}, {pipeline_mode = #tpu.pipeline_mode<synchronous>, transform_indices = @transform_3, window_bounds = array<i64: 128, 512>}, {transform_indices = @transform_4, window_bounds = array<i64: 8, 8, 128>}, {transform_indices = @transform_5, window_bounds = array<i64: 8, 128>}, {transform_indices = @transform_6, window_bounds = array<i64: 8, 128>}]} {
    %c0_i32 = arith.constant 0 : i32
    %0 = arith.cmpi eq, %arg1, %c0_i32 : i32
    %1 = arith.extui %0 : i1 to i32
    %c0_i32_0 = arith.constant 0 : i32
    %2 = arith.cmpi ne, %1, %c0_i32_0 : i32
    scf.if %2 {
      %c0_90 = arith.constant 0 : index
      %c0_91 = arith.constant 0 : index
      %298 = vector.load %arg3[%c0_90, %c0_91] : memref<8x128xf32, #tpu.memory_space<vmem>>, vector<8x128xf32>
      %c0_92 = arith.constant 0 : index
      %c0_93 = arith.constant 0 : index
      %299 = vector.load %arg9[%c0_92, %c0_93] : memref<8x128xf32, #tpu.memory_space<vmem>>, vector<8x128xf32>
      tpu.vector_store %arg9[%c0_92, %c0_93], %298 {strides = array<i32>} : memref<8x128xf32, #tpu.memory_space<vmem>>, vector<8x128xf32>,
      %c0_94 = arith.constant 0 : index
      %c0_95 = arith.constant 0 : index
      %300 = vector.load %arg4[%c0_94, %c0_95] : memref<8x128xf32, #tpu.memory_space<vmem>>, vector<8x128xf32>
      %c0_96 = arith.constant 0 : index
      %c0_97 = arith.constant 0 : index
      %301 = vector.load %arg10[%c0_96, %c0_97] : memref<8x128xf32, #tpu.memory_space<vmem>>, vector<8x128xf32>
      tpu.vector_store %arg10[%c0_96, %c0_97], %300 {strides = array<i32>} : memref<8x128xf32, #tpu.memory_space<vmem>>, vector<8x128xf32>,
    } else {
    }
    %c0 = arith.constant 0 : index
    %c0_1 = arith.constant 0 : index
    %3 = vector.load %arg9[%c0, %c0_1] : memref<8x128xf32, #tpu.memory_space<vmem>>, vector<8x128xf32>
    %c0_2 = arith.constant 0 : index
    %c0_3 = arith.constant 0 : index
    %4 = vector.load %arg10[%c0_2, %c0_3] : memref<8x128xf32, #tpu.memory_space<vmem>>, vector<8x128xf32>
    %c0_i32_4 = arith.constant 0 : i32
    %5 = arith.index_cast %c0_i32_4 : i32 to index
    %c0_5 = arith.constant 0 : index
    %c0_6 = arith.constant 0 : index
    %6 = vector.load %arg2[%5, %c0_5, %c0_6] : memref<8x8x512xf32, #tpu.memory_space<vmem>>, vector<1x8x512xf32>
    %7 = vector.shape_cast %6 : vector<1x8x512xf32> to vector<8x512xf32>
    %8 = arith.truncf %3 : vector<8x128xf32> to vector<8x128xbf16>
    %c0_7 = arith.constant 0 : index
    %c0_8 = arith.constant 0 : index
    %9 = vector.load %arg5[%c0_7, %c0_8] : memref<128x512xbf16, #tpu.memory_space<vmem>>, vector<128x512xbf16>
    %cst = arith.constant dense<0.000000e+00> : vector<8x512xf32>
    %10 = tpu.matmul %8, %9, %cst {dimension_numbers = #tpu.dot_dimension_numbers<[1], [0], [0], [1], [0, 0, 1, 1], [], []>} : vector<8x128xbf16>, vector<128x512xbf16>, vector<8x512xf32> -> vector<8x512xf32>
    %11 = arith.addf %7, %10 : vector<8x512xf32>
    %12 = vector.extract_strided_slice %11 {offsets = [0, 0], sizes = [8, 128], strides = [1, 1]} : vector<8x512xf32> to vector<8x128xf32>
    %13 = arith.negf %12 : vector<8x128xf32>
    %14 = math.exp %13 : vector<8x128xf32>
    %cst_9 = arith.constant 1.000000e+00 : f32
    %15 = vector.broadcast %cst_9 : f32 to vector<8x128xf32>
    %16 = arith.addf %15, %14 : vector<8x128xf32>
    %17 = arith.divf %15, %16 : vector<8x128xf32>
    %18 = vector.extract_strided_slice %11 {offsets = [0, 128], sizes = [8, 128], strides = [1, 1]} : vector<8x512xf32> to vector<8x128xf32>
    %19 = arith.negf %18 : vector<8x128xf32>
    %20 = math.exp %19 : vector<8x128xf32>
    %cst_10 = arith.constant 1.000000e+00 : f32
    %21 = vector.broadcast %cst_10 : f32 to vector<8x128xf32>
    %22 = arith.addf %21, %20 : vector<8x128xf32>
    %23 = arith.divf %21, %22 : vector<8x128xf32>
    %24 = vector.extract_strided_slice %11 {offsets = [0, 256], sizes = [8, 128], strides = [1, 1]} : vector<8x512xf32> to vector<8x128xf32>
    %25 = math.tanh %24 : vector<8x128xf32>
    %26 = vector.extract_strided_slice %11 {offsets = [0, 384], sizes = [8, 128], strides = [1, 1]} : vector<8x512xf32> to vector<8x128xf32>
    %27 = arith.negf %26 : vector<8x128xf32>
    %28 = math.exp %27 : vector<8x128xf32>
    %cst_11 = arith.constant 1.000000e+00 : f32
    %29 = vector.broadcast %cst_11 : f32 to vector<8x128xf32>
    %30 = arith.addf %29, %28 : vector<8x128xf32>
    %31 = arith.divf %29, %30 : vector<8x128xf32>
    %32 = arith.mulf %23, %4 : vector<8x128xf32>
    %33 = arith.mulf %17, %25 : vector<8x128xf32>
    %34 = arith.addf %32, %33 : vector<8x128xf32>
    %35 = math.tanh %34 : vector<8x128xf32>
    %36 = arith.mulf %31, %35 : vector<8x128xf32>
    %37 = arith.index_cast %c0_i32_4 : i32 to index
    %c0_12 = arith.constant 0 : index
    %c0_13 = arith.constant 0 : index
    %38 = vector.load %arg6[%37, %c0_12, %c0_13] : memref<8x8x128xf32, #tpu.memory_space<vmem>>, vector<1x8x128xf32>
    %39 = vector.shape_cast %38 : vector<1x8x128xf32> to vector<8x128xf32>
    %40 = vector.shape_cast %36 : vector<8x128xf32> to vector<1x8x128xf32>
    tpu.vector_store %arg6[%37, %c0_12, %c0_13], %40 {strides = array<i32>} : memref<8x8x128xf32, #tpu.memory_space<vmem>>, vector<1x8x128xf32>,
    %c1_i32 = arith.constant 1 : i32
    %41 = arith.index_cast %c1_i32 : i32 to index
    %c0_14 = arith.constant 0 : index
    %c0_15 = arith.constant 0 : index
    %42 = vector.load %arg2[%41, %c0_14, %c0_15] : memref<8x8x512xf32, #tpu.memory_space<vmem>>, vector<1x8x512xf32>
    %43 = vector.shape_cast %42 : vector<1x8x512xf32> to vector<8x512xf32>
    %44 = arith.truncf %36 : vector<8x128xf32> to vector<8x128xbf16>
    %c0_16 = arith.constant 0 : index
    %c0_17 = arith.constant 0 : index
    %45 = vector.load %arg5[%c0_16, %c0_17] : memref<128x512xbf16, #tpu.memory_space<vmem>>, vector<128x512xbf16>
    %cst_18 = arith.constant dense<0.000000e+00> : vector<8x512xf32>
    %46 = tpu.matmul %44, %45, %cst_18 {dimension_numbers = #tpu.dot_dimension_numbers<[1], [0], [0], [1], [0, 0, 1, 1], [], []>} : vector<8x128xbf16>, vector<128x512xbf16>, vector<8x512xf32> -> vector<8x512xf32>
    %47 = arith.addf %43, %46 : vector<8x512xf32>
    %48 = vector.extract_strided_slice %47 {offsets = [0, 0], sizes = [8, 128], strides = [1, 1]} : vector<8x512xf32> to vector<8x128xf32>
    %49 = arith.negf %48 : vector<8x128xf32>
    %50 = math.exp %49 : vector<8x128xf32>
    %cst_19 = arith.constant 1.000000e+00 : f32
    %51 = vector.broadcast %cst_19 : f32 to vector<8x128xf32>
    %52 = arith.addf %51, %50 : vector<8x128xf32>
    %53 = arith.divf %51, %52 : vector<8x128xf32>
    %54 = vector.extract_strided_slice %47 {offsets = [0, 128], sizes = [8, 128], strides = [1, 1]} : vector<8x512xf32> to vector<8x128xf32>
    %55 = arith.negf %54 : vector<8x128xf32>
    %56 = math.exp %55 : vector<8x128xf32>
    %cst_20 = arith.constant 1.000000e+00 : f32
    %57 = vector.broadcast %cst_20 : f32 to vector<8x128xf32>
    %58 = arith.addf %57, %56 : vector<8x128xf32>
    %59 = arith.divf %57, %58 : vector<8x128xf32>
    %60 = vector.extract_strided_slice %47 {offsets = [0, 256], sizes = [8, 128], strides = [1, 1]} : vector<8x512xf32> to vector<8x128xf32>
    %61 = math.tanh %60 : vector<8x128xf32>
    %62 = vector.extract_strided_slice %47 {offsets = [0, 384], sizes = [8, 128], strides = [1, 1]} : vector<8x512xf32> to vector<8x128xf32>
    %63 = arith.negf %62 : vector<8x128xf32>
    %64 = math.exp %63 : vector<8x128xf32>
    %cst_21 = arith.constant 1.000000e+00 : f32
    %65 = vector.broadcast %cst_21 : f32 to vector<8x128xf32>
    %66 = arith.addf %65, %64 : vector<8x128xf32>
    %67 = arith.divf %65, %66 : vector<8x128xf32>
    %68 = arith.mulf %59, %34 : vector<8x128xf32>
    %69 = arith.mulf %53, %61 : vector<8x128xf32>
    %70 = arith.addf %68, %69 : vector<8x128xf32>
    %71 = math.tanh %70 : vector<8x128xf32>
    %72 = arith.mulf %67, %71 : vector<8x128xf32>
    %73 = arith.index_cast %c1_i32 : i32 to index
    %c0_22 = arith.constant 0 : index
    %c0_23 = arith.constant 0 : index
    %74 = vector.load %arg6[%73, %c0_22, %c0_23] : memref<8x8x128xf32, #tpu.memory_space<vmem>>, vector<1x8x128xf32>
    %75 = vector.shape_cast %74 : vector<1x8x128xf32> to vector<8x128xf32>
    %76 = vector.shape_cast %72 : vector<8x128xf32> to vector<1x8x128xf32>
    tpu.vector_store %arg6[%73, %c0_22, %c0_23], %76 {strides = array<i32>} : memref<8x8x128xf32, #tpu.memory_space<vmem>>, vector<1x8x128xf32>,
    %c2_i32 = arith.constant 2 : i32
    %77 = arith.index_cast %c2_i32 : i32 to index
    %c0_24 = arith.constant 0 : index
    %c0_25 = arith.constant 0 : index
    %78 = vector.load %arg2[%77, %c0_24, %c0_25] : memref<8x8x512xf32, #tpu.memory_space<vmem>>, vector<1x8x512xf32>
    %79 = vector.shape_cast %78 : vector<1x8x512xf32> to vector<8x512xf32>
    %80 = arith.truncf %72 : vector<8x128xf32> to vector<8x128xbf16>
    %c0_26 = arith.constant 0 : index
    %c0_27 = arith.constant 0 : index
    %81 = vector.load %arg5[%c0_26, %c0_27] : memref<128x512xbf16, #tpu.memory_space<vmem>>, vector<128x512xbf16>
    %cst_28 = arith.constant dense<0.000000e+00> : vector<8x512xf32>
    %82 = tpu.matmul %80, %81, %cst_28 {dimension_numbers = #tpu.dot_dimension_numbers<[1], [0], [0], [1], [0, 0, 1, 1], [], []>} : vector<8x128xbf16>, vector<128x512xbf16>, vector<8x512xf32> -> vector<8x512xf32>
    %83 = arith.addf %79, %82 : vector<8x512xf32>
    %84 = vector.extract_strided_slice %83 {offsets = [0, 0], sizes = [8, 128], strides = [1, 1]} : vector<8x512xf32> to vector<8x128xf32>
    %85 = arith.negf %84 : vector<8x128xf32>
    %86 = math.exp %85 : vector<8x128xf32>
    %cst_29 = arith.constant 1.000000e+00 : f32
    %87 = vector.broadcast %cst_29 : f32 to vector<8x128xf32>
    %88 = arith.addf %87, %86 : vector<8x128xf32>
    %89 = arith.divf %87, %88 : vector<8x128xf32>
    %90 = vector.extract_strided_slice %83 {offsets = [0, 128], sizes = [8, 128], strides = [1, 1]} : vector<8x512xf32> to vector<8x128xf32>
    %91 = arith.negf %90 : vector<8x128xf32>
    %92 = math.exp %91 : vector<8x128xf32>
    %cst_30 = arith.constant 1.000000e+00 : f32
    %93 = vector.broadcast %cst_30 : f32 to vector<8x128xf32>
    %94 = arith.addf %93, %92 : vector<8x128xf32>
    %95 = arith.divf %93, %94 : vector<8x128xf32>
    %96 = vector.extract_strided_slice %83 {offsets = [0, 256], sizes = [8, 128], strides = [1, 1]} : vector<8x512xf32> to vector<8x128xf32>
    %97 = math.tanh %96 : vector<8x128xf32>
    %98 = vector.extract_strided_slice %83 {offsets = [0, 384], sizes = [8, 128], strides = [1, 1]} : vector<8x512xf32> to vector<8x128xf32>
    %99 = arith.negf %98 : vector<8x128xf32>
    %100 = math.exp %99 : vector<8x128xf32>
    %cst_31 = arith.constant 1.000000e+00 : f32
    %101 = vector.broadcast %cst_31 : f32 to vector<8x128xf32>
    %102 = arith.addf %101, %100 : vector<8x128xf32>
    %103 = arith.divf %101, %102 : vector<8x128xf32>
    %104 = arith.mulf %95, %70 : vector<8x128xf32>
    %105 = arith.mulf %89, %97 : vector<8x128xf32>
    %106 = arith.addf %104, %105 : vector<8x128xf32>
    %107 = math.tanh %106 : vector<8x128xf32>
    %108 = arith.mulf %103, %107 : vector<8x128xf32>
    %109 = arith.index_cast %c2_i32 : i32 to index
    %c0_32 = arith.constant 0 : index
    %c0_33 = arith.constant 0 : index
    %110 = vector.load %arg6[%109, %c0_32, %c0_33] : memref<8x8x128xf32, #tpu.memory_space<vmem>>, vector<1x8x128xf32>
    %111 = vector.shape_cast %110 : vector<1x8x128xf32> to vector<8x128xf32>
    %112 = vector.shape_cast %108 : vector<8x128xf32> to vector<1x8x128xf32>
    tpu.vector_store %arg6[%109, %c0_32, %c0_33], %112 {strides = array<i32>} : memref<8x8x128xf32, #tpu.memory_space<vmem>>, vector<1x8x128xf32>,
    %c3_i32 = arith.constant 3 : i32
    %113 = arith.index_cast %c3_i32 : i32 to index
    %c0_34 = arith.constant 0 : index
    %c0_35 = arith.constant 0 : index
    %114 = vector.load %arg2[%113, %c0_34, %c0_35] : memref<8x8x512xf32, #tpu.memory_space<vmem>>, vector<1x8x512xf32>
    %115 = vector.shape_cast %114 : vector<1x8x512xf32> to vector<8x512xf32>
    %116 = arith.truncf %108 : vector<8x128xf32> to vector<8x128xbf16>
    %c0_36 = arith.constant 0 : index
    %c0_37 = arith.constant 0 : index
    %117 = vector.load %arg5[%c0_36, %c0_37] : memref<128x512xbf16, #tpu.memory_space<vmem>>, vector<128x512xbf16>
    %cst_38 = arith.constant dense<0.000000e+00> : vector<8x512xf32>
    %118 = tpu.matmul %116, %117, %cst_38 {dimension_numbers = #tpu.dot_dimension_numbers<[1], [0], [0], [1], [0, 0, 1, 1], [], []>} : vector<8x128xbf16>, vector<128x512xbf16>, vector<8x512xf32> -> vector<8x512xf32>
    %119 = arith.addf %115, %118 : vector<8x512xf32>
    %120 = vector.extract_strided_slice %119 {offsets = [0, 0], sizes = [8, 128], strides = [1, 1]} : vector<8x512xf32> to vector<8x128xf32>
    %121 = arith.negf %120 : vector<8x128xf32>
    %122 = math.exp %121 : vector<8x128xf32>
    %cst_39 = arith.constant 1.000000e+00 : f32
    %123 = vector.broadcast %cst_39 : f32 to vector<8x128xf32>
    %124 = arith.addf %123, %122 : vector<8x128xf32>
    %125 = arith.divf %123, %124 : vector<8x128xf32>
    %126 = vector.extract_strided_slice %119 {offsets = [0, 128], sizes = [8, 128], strides = [1, 1]} : vector<8x512xf32> to vector<8x128xf32>
    %127 = arith.negf %126 : vector<8x128xf32>
    %128 = math.exp %127 : vector<8x128xf32>
    %cst_40 = arith.constant 1.000000e+00 : f32
    %129 = vector.broadcast %cst_40 : f32 to vector<8x128xf32>
    %130 = arith.addf %129, %128 : vector<8x128xf32>
    %131 = arith.divf %129, %130 : vector<8x128xf32>
    %132 = vector.extract_strided_slice %119 {offsets = [0, 256], sizes = [8, 128], strides = [1, 1]} : vector<8x512xf32> to vector<8x128xf32>
    %133 = math.tanh %132 : vector<8x128xf32>
    %134 = vector.extract_strided_slice %119 {offsets = [0, 384], sizes = [8, 128], strides = [1, 1]} : vector<8x512xf32> to vector<8x128xf32>
    %135 = arith.negf %134 : vector<8x128xf32>
    %136 = math.exp %135 : vector<8x128xf32>
    %cst_41 = arith.constant 1.000000e+00 : f32
    %137 = vector.broadcast %cst_41 : f32 to vector<8x128xf32>
    %138 = arith.addf %137, %136 : vector<8x128xf32>
    %139 = arith.divf %137, %138 : vector<8x128xf32>
    %140 = arith.mulf %131, %106 : vector<8x128xf32>
    %141 = arith.mulf %125, %133 : vector<8x128xf32>
    %142 = arith.addf %140, %141 : vector<8x128xf32>
    %143 = math.tanh %142 : vector<8x128xf32>
    %144 = arith.mulf %139, %143 : vector<8x128xf32>
    %145 = arith.index_cast %c3_i32 : i32 to index
    %c0_42 = arith.constant 0 : index
    %c0_43 = arith.constant 0 : index
    %146 = vector.load %arg6[%145, %c0_42, %c0_43] : memref<8x8x128xf32, #tpu.memory_space<vmem>>, vector<1x8x128xf32>
    %147 = vector.shape_cast %146 : vector<1x8x128xf32> to vector<8x128xf32>
    %148 = vector.shape_cast %144 : vector<8x128xf32> to vector<1x8x128xf32>
    tpu.vector_store %arg6[%145, %c0_42, %c0_43], %148 {strides = array<i32>} : memref<8x8x128xf32, #tpu.memory_space<vmem>>, vector<1x8x128xf32>,
    %c4_i32 = arith.constant 4 : i32
    %149 = arith.index_cast %c4_i32 : i32 to index
    %c0_44 = arith.constant 0 : index
    %c0_45 = arith.constant 0 : index
    %150 = vector.load %arg2[%149, %c0_44, %c0_45] : memref<8x8x512xf32, #tpu.memory_space<vmem>>, vector<1x8x512xf32>
    %151 = vector.shape_cast %150 : vector<1x8x512xf32> to vector<8x512xf32>
    %152 = arith.truncf %144 : vector<8x128xf32> to vector<8x128xbf16>
    %c0_46 = arith.constant 0 : index
    %c0_47 = arith.constant 0 : index
    %153 = vector.load %arg5[%c0_46, %c0_47] : memref<128x512xbf16, #tpu.memory_space<vmem>>, vector<128x512xbf16>
    %cst_48 = arith.constant dense<0.000000e+00> : vector<8x512xf32>
    %154 = tpu.matmul %152, %153, %cst_48 {dimension_numbers = #tpu.dot_dimension_numbers<[1], [0], [0], [1], [0, 0, 1, 1], [], []>} : vector<8x128xbf16>, vector<128x512xbf16>, vector<8x512xf32> -> vector<8x512xf32>
    %155 = arith.addf %151, %154 : vector<8x512xf32>
    %156 = vector.extract_strided_slice %155 {offsets = [0, 0], sizes = [8, 128], strides = [1, 1]} : vector<8x512xf32> to vector<8x128xf32>
    %157 = arith.negf %156 : vector<8x128xf32>
    %158 = math.exp %157 : vector<8x128xf32>
    %cst_49 = arith.constant 1.000000e+00 : f32
    %159 = vector.broadcast %cst_49 : f32 to vector<8x128xf32>
    %160 = arith.addf %159, %158 : vector<8x128xf32>
    %161 = arith.divf %159, %160 : vector<8x128xf32>
    %162 = vector.extract_strided_slice %155 {offsets = [0, 128], sizes = [8, 128], strides = [1, 1]} : vector<8x512xf32> to vector<8x128xf32>
    %163 = arith.negf %162 : vector<8x128xf32>
    %164 = math.exp %163 : vector<8x128xf32>
    %cst_50 = arith.constant 1.000000e+00 : f32
    %165 = vector.broadcast %cst_50 : f32 to vector<8x128xf32>
    %166 = arith.addf %165, %164 : vector<8x128xf32>
    %167 = arith.divf %165, %166 : vector<8x128xf32>
    %168 = vector.extract_strided_slice %155 {offsets = [0, 256], sizes = [8, 128], strides = [1, 1]} : vector<8x512xf32> to vector<8x128xf32>
    %169 = math.tanh %168 : vector<8x128xf32>
    %170 = vector.extract_strided_slice %155 {offsets = [0, 384], sizes = [8, 128], strides = [1, 1]} : vector<8x512xf32> to vector<8x128xf32>
    %171 = arith.negf %170 : vector<8x128xf32>
    %172 = math.exp %171 : vector<8x128xf32>
    %cst_51 = arith.constant 1.000000e+00 : f32
    %173 = vector.broadcast %cst_51 : f32 to vector<8x128xf32>
    %174 = arith.addf %173, %172 : vector<8x128xf32>
    %175 = arith.divf %173, %174 : vector<8x128xf32>
    %176 = arith.mulf %167, %142 : vector<8x128xf32>
    %177 = arith.mulf %161, %169 : vector<8x128xf32>
    %178 = arith.addf %176, %177 : vector<8x128xf32>
    %179 = math.tanh %178 : vector<8x128xf32>
    %180 = arith.mulf %175, %179 : vector<8x128xf32>
    %181 = arith.index_cast %c4_i32 : i32 to index
    %c0_52 = arith.constant 0 : index
    %c0_53 = arith.constant 0 : index
    %182 = vector.load %arg6[%181, %c0_52, %c0_53] : memref<8x8x128xf32, #tpu.memory_space<vmem>>, vector<1x8x128xf32>
    %183 = vector.shape_cast %182 : vector<1x8x128xf32> to vector<8x128xf32>
    %184 = vector.shape_cast %180 : vector<8x128xf32> to vector<1x8x128xf32>
    tpu.vector_store %arg6[%181, %c0_52, %c0_53], %184 {strides = array<i32>} : memref<8x8x128xf32, #tpu.memory_space<vmem>>, vector<1x8x128xf32>,
    %c5_i32 = arith.constant 5 : i32
    %185 = arith.index_cast %c5_i32 : i32 to index
    %c0_54 = arith.constant 0 : index
    %c0_55 = arith.constant 0 : index
    %186 = vector.load %arg2[%185, %c0_54, %c0_55] : memref<8x8x512xf32, #tpu.memory_space<vmem>>, vector<1x8x512xf32>
    %187 = vector.shape_cast %186 : vector<1x8x512xf32> to vector<8x512xf32>
    %188 = arith.truncf %180 : vector<8x128xf32> to vector<8x128xbf16>
    %c0_56 = arith.constant 0 : index
    %c0_57 = arith.constant 0 : index
    %189 = vector.load %arg5[%c0_56, %c0_57] : memref<128x512xbf16, #tpu.memory_space<vmem>>, vector<128x512xbf16>
    %cst_58 = arith.constant dense<0.000000e+00> : vector<8x512xf32>
    %190 = tpu.matmul %188, %189, %cst_58 {dimension_numbers = #tpu.dot_dimension_numbers<[1], [0], [0], [1], [0, 0, 1, 1], [], []>} : vector<8x128xbf16>, vector<128x512xbf16>, vector<8x512xf32> -> vector<8x512xf32>
    %191 = arith.addf %187, %190 : vector<8x512xf32>
    %192 = vector.extract_strided_slice %191 {offsets = [0, 0], sizes = [8, 128], strides = [1, 1]} : vector<8x512xf32> to vector<8x128xf32>
    %193 = arith.negf %192 : vector<8x128xf32>
    %194 = math.exp %193 : vector<8x128xf32>
    %cst_59 = arith.constant 1.000000e+00 : f32
    %195 = vector.broadcast %cst_59 : f32 to vector<8x128xf32>
    %196 = arith.addf %195, %194 : vector<8x128xf32>
    %197 = arith.divf %195, %196 : vector<8x128xf32>
    %198 = vector.extract_strided_slice %191 {offsets = [0, 128], sizes = [8, 128], strides = [1, 1]} : vector<8x512xf32> to vector<8x128xf32>
    %199 = arith.negf %198 : vector<8x128xf32>
    %200 = math.exp %199 : vector<8x128xf32>
    %cst_60 = arith.constant 1.000000e+00 : f32
    %201 = vector.broadcast %cst_60 : f32 to vector<8x128xf32>
    %202 = arith.addf %201, %200 : vector<8x128xf32>
    %203 = arith.divf %201, %202 : vector<8x128xf32>
    %204 = vector.extract_strided_slice %191 {offsets = [0, 256], sizes = [8, 128], strides = [1, 1]} : vector<8x512xf32> to vector<8x128xf32>
    %205 = math.tanh %204 : vector<8x128xf32>
    %206 = vector.extract_strided_slice %191 {offsets = [0, 384], sizes = [8, 128], strides = [1, 1]} : vector<8x512xf32> to vector<8x128xf32>
    %207 = arith.negf %206 : vector<8x128xf32>
    %208 = math.exp %207 : vector<8x128xf32>
    %cst_61 = arith.constant 1.000000e+00 : f32
    %209 = vector.broadcast %cst_61 : f32 to vector<8x128xf32>
    %210 = arith.addf %209, %208 : vector<8x128xf32>
    %211 = arith.divf %209, %210 : vector<8x128xf32>
    %212 = arith.mulf %203, %178 : vector<8x128xf32>
    %213 = arith.mulf %197, %205 : vector<8x128xf32>
    %214 = arith.addf %212, %213 : vector<8x128xf32>
    %215 = math.tanh %214 : vector<8x128xf32>
    %216 = arith.mulf %211, %215 : vector<8x128xf32>
    %217 = arith.index_cast %c5_i32 : i32 to index
    %c0_62 = arith.constant 0 : index
    %c0_63 = arith.constant 0 : index
    %218 = vector.load %arg6[%217, %c0_62, %c0_63] : memref<8x8x128xf32, #tpu.memory_space<vmem>>, vector<1x8x128xf32>
    %219 = vector.shape_cast %218 : vector<1x8x128xf32> to vector<8x128xf32>
    %220 = vector.shape_cast %216 : vector<8x128xf32> to vector<1x8x128xf32>
    tpu.vector_store %arg6[%217, %c0_62, %c0_63], %220 {strides = array<i32>} : memref<8x8x128xf32, #tpu.memory_space<vmem>>, vector<1x8x128xf32>,
    %c6_i32 = arith.constant 6 : i32
    %221 = arith.index_cast %c6_i32 : i32 to index
    %c0_64 = arith.constant 0 : index
    %c0_65 = arith.constant 0 : index
    %222 = vector.load %arg2[%221, %c0_64, %c0_65] : memref<8x8x512xf32, #tpu.memory_space<vmem>>, vector<1x8x512xf32>
    %223 = vector.shape_cast %222 : vector<1x8x512xf32> to vector<8x512xf32>
    %224 = arith.truncf %216 : vector<8x128xf32> to vector<8x128xbf16>
    %c0_66 = arith.constant 0 : index
    %c0_67 = arith.constant 0 : index
    %225 = vector.load %arg5[%c0_66, %c0_67] : memref<128x512xbf16, #tpu.memory_space<vmem>>, vector<128x512xbf16>
    %cst_68 = arith.constant dense<0.000000e+00> : vector<8x512xf32>
    %226 = tpu.matmul %224, %225, %cst_68 {dimension_numbers = #tpu.dot_dimension_numbers<[1], [0], [0], [1], [0, 0, 1, 1], [], []>} : vector<8x128xbf16>, vector<128x512xbf16>, vector<8x512xf32> -> vector<8x512xf32>
    %227 = arith.addf %223, %226 : vector<8x512xf32>
    %228 = vector.extract_strided_slice %227 {offsets = [0, 0], sizes = [8, 128], strides = [1, 1]} : vector<8x512xf32> to vector<8x128xf32>
    %229 = arith.negf %228 : vector<8x128xf32>
    %230 = math.exp %229 : vector<8x128xf32>
    %cst_69 = arith.constant 1.000000e+00 : f32
    %231 = vector.broadcast %cst_69 : f32 to vector<8x128xf32>
    %232 = arith.addf %231, %230 : vector<8x128xf32>
    %233 = arith.divf %231, %232 : vector<8x128xf32>
    %234 = vector.extract_strided_slice %227 {offsets = [0, 128], sizes = [8, 128], strides = [1, 1]} : vector<8x512xf32> to vector<8x128xf32>
    %235 = arith.negf %234 : vector<8x128xf32>
    %236 = math.exp %235 : vector<8x128xf32>
    %cst_70 = arith.constant 1.000000e+00 : f32
    %237 = vector.broadcast %cst_70 : f32 to vector<8x128xf32>
    %238 = arith.addf %237, %236 : vector<8x128xf32>
    %239 = arith.divf %237, %238 : vector<8x128xf32>
    %240 = vector.extract_strided_slice %227 {offsets = [0, 256], sizes = [8, 128], strides = [1, 1]} : vector<8x512xf32> to vector<8x128xf32>
    %241 = math.tanh %240 : vector<8x128xf32>
    %242 = vector.extract_strided_slice %227 {offsets = [0, 384], sizes = [8, 128], strides = [1, 1]} : vector<8x512xf32> to vector<8x128xf32>
    %243 = arith.negf %242 : vector<8x128xf32>
    %244 = math.exp %243 : vector<8x128xf32>
    %cst_71 = arith.constant 1.000000e+00 : f32
    %245 = vector.broadcast %cst_71 : f32 to vector<8x128xf32>
    %246 = arith.addf %245, %244 : vector<8x128xf32>
    %247 = arith.divf %245, %246 : vector<8x128xf32>
    %248 = arith.mulf %239, %214 : vector<8x128xf32>
    %249 = arith.mulf %233, %241 : vector<8x128xf32>
    %250 = arith.addf %248, %249 : vector<8x128xf32>
    %251 = math.tanh %250 : vector<8x128xf32>
    %252 = arith.mulf %247, %251 : vector<8x128xf32>
    %253 = arith.index_cast %c6_i32 : i32 to index
    %c0_72 = arith.constant 0 : index
    %c0_73 = arith.constant 0 : index
    %254 = vector.load %arg6[%253, %c0_72, %c0_73] : memref<8x8x128xf32, #tpu.memory_space<vmem>>, vector<1x8x128xf32>
    %255 = vector.shape_cast %254 : vector<1x8x128xf32> to vector<8x128xf32>
    %256 = vector.shape_cast %252 : vector<8x128xf32> to vector<1x8x128xf32>
    tpu.vector_store %arg6[%253, %c0_72, %c0_73], %256 {strides = array<i32>} : memref<8x8x128xf32, #tpu.memory_space<vmem>>, vector<1x8x128xf32>,
    %c7_i32 = arith.constant 7 : i32
    %257 = arith.index_cast %c7_i32 : i32 to index
    %c0_74 = arith.constant 0 : index
    %c0_75 = arith.constant 0 : index
    %258 = vector.load %arg2[%257, %c0_74, %c0_75] : memref<8x8x512xf32, #tpu.memory_space<vmem>>, vector<1x8x512xf32>
    %259 = vector.shape_cast %258 : vector<1x8x512xf32> to vector<8x512xf32>
    %260 = arith.truncf %252 : vector<8x128xf32> to vector<8x128xbf16>
    %c0_76 = arith.constant 0 : index
    %c0_77 = arith.constant 0 : index
    %261 = vector.load %arg5[%c0_76, %c0_77] : memref<128x512xbf16, #tpu.memory_space<vmem>>, vector<128x512xbf16>
    %cst_78 = arith.constant dense<0.000000e+00> : vector<8x512xf32>
    %262 = tpu.matmul %260, %261, %cst_78 {dimension_numbers = #tpu.dot_dimension_numbers<[1], [0], [0], [1], [0, 0, 1, 1], [], []>} : vector<8x128xbf16>, vector<128x512xbf16>, vector<8x512xf32> -> vector<8x512xf32>
    %263 = arith.addf %259, %262 : vector<8x512xf32>
    %264 = vector.extract_strided_slice %263 {offsets = [0, 0], sizes = [8, 128], strides = [1, 1]} : vector<8x512xf32> to vector<8x128xf32>
    %265 = arith.negf %264 : vector<8x128xf32>
    %266 = math.exp %265 : vector<8x128xf32>
    %cst_79 = arith.constant 1.000000e+00 : f32
    %267 = vector.broadcast %cst_79 : f32 to vector<8x128xf32>
    %268 = arith.addf %267, %266 : vector<8x128xf32>
    %269 = arith.divf %267, %268 : vector<8x128xf32>
    %270 = vector.extract_strided_slice %263 {offsets = [0, 128], sizes = [8, 128], strides = [1, 1]} : vector<8x512xf32> to vector<8x128xf32>
    %271 = arith.negf %270 : vector<8x128xf32>
    %272 = math.exp %271 : vector<8x128xf32>
    %cst_80 = arith.constant 1.000000e+00 : f32
    %273 = vector.broadcast %cst_80 : f32 to vector<8x128xf32>
    %274 = arith.addf %273, %272 : vector<8x128xf32>
    %275 = arith.divf %273, %274 : vector<8x128xf32>
    %276 = vector.extract_strided_slice %263 {offsets = [0, 256], sizes = [8, 128], strides = [1, 1]} : vector<8x512xf32> to vector<8x128xf32>
    %277 = math.tanh %276 : vector<8x128xf32>
    %278 = vector.extract_strided_slice %263 {offsets = [0, 384], sizes = [8, 128], strides = [1, 1]} : vector<8x512xf32> to vector<8x128xf32>
    %279 = arith.negf %278 : vector<8x128xf32>
    %280 = math.exp %279 : vector<8x128xf32>
    %cst_81 = arith.constant 1.000000e+00 : f32
    %281 = vector.broadcast %cst_81 : f32 to vector<8x128xf32>
    %282 = arith.addf %281, %280 : vector<8x128xf32>
    %283 = arith.divf %281, %282 : vector<8x128xf32>
    %284 = arith.mulf %275, %250 : vector<8x128xf32>
    %285 = arith.mulf %269, %277 : vector<8x128xf32>
    %286 = arith.addf %284, %285 : vector<8x128xf32>
    %287 = math.tanh %286 : vector<8x128xf32>
    %288 = arith.mulf %283, %287 : vector<8x128xf32>
    %289 = arith.index_cast %c7_i32 : i32 to index
    %c0_82 = arith.constant 0 : index
    %c0_83 = arith.constant 0 : index
    %290 = vector.load %arg6[%289, %c0_82, %c0_83] : memref<8x8x128xf32, #tpu.memory_space<vmem>>, vector<1x8x128xf32>
    %291 = vector.shape_cast %290 : vector<1x8x128xf32> to vector<8x128xf32>
    %292 = vector.shape_cast %288 : vector<8x128xf32> to vector<1x8x128xf32>
    tpu.vector_store %arg6[%289, %c0_82, %c0_83], %292 {strides = array<i32>} : memref<8x8x128xf32, #tpu.memory_space<vmem>>, vector<1x8x128xf32>,
    %c8_i32 = arith.constant 8 : i32
    %c0_84 = arith.constant 0 : index
    %c0_85 = arith.constant 0 : index
    %293 = vector.load %arg9[%c0_84, %c0_85] : memref<8x128xf32, #tpu.memory_space<vmem>>, vector<8x128xf32>
    tpu.vector_store %arg9[%c0_84, %c0_85], %288 {strides = array<i32>} : memref<8x128xf32, #tpu.memory_space<vmem>>, vector<8x128xf32>,
    %c0_86 = arith.constant 0 : index
    %c0_87 = arith.constant 0 : index
    %294 = vector.load %arg10[%c0_86, %c0_87] : memref<8x128xf32, #tpu.memory_space<vmem>>, vector<8x128xf32>
    tpu.vector_store %arg10[%c0_86, %c0_87], %286 {strides = array<i32>} : memref<8x128xf32, #tpu.memory_space<vmem>>, vector<8x128xf32>,
    %c1_i32_88 = arith.constant 1 : i32
    %295 = arith.cmpi eq, %arg1, %c1_i32_88 : i32
    %296 = arith.extui %295 : i1 to i32
    %c0_i32_89 = arith.constant 0 : i32
    %297 = arith.cmpi ne, %296, %c0_i32_89 : i32
    scf.if %297 {
      %c0_90 = arith.constant 0 : index
      %c0_91 = arith.constant 0 : index
      %298 = vector.load %arg7[%c0_90, %c0_91] : memref<8x128xf32, #tpu.memory_space<vmem>>, vector<8x128xf32>
      tpu.vector_store %arg7[%c0_90, %c0_91], %288 {strides = array<i32>} : memref<8x128xf32, #tpu.memory_space<vmem>>, vector<8x128xf32>,
      %c0_92 = arith.constant 0 : index
      %c0_93 = arith.constant 0 : index
      %299 = vector.load %arg8[%c0_92, %c0_93] : memref<8x128xf32, #tpu.memory_space<vmem>>, vector<8x128xf32>
      tpu.vector_store %arg8[%c0_92, %c0_93], %286 {strides = array<i32>} : memref<8x128xf32, #tpu.memory_space<vmem>>, vector<8x128xf32>,
    } else {
    }
    return
  }
  func.func @transform_0(%arg0: i32, %arg1: i32) -> (i32, i32, i32) {
    %c0_i32 = arith.constant 0 : i32
    %c0_i32_0 = arith.constant 0 : i32
    return %arg1, %arg0, %c0_i32 : i32, i32, i32
  }
  func.func @transform_1(%arg0: i32, %arg1: i32) -> (i32, i32) {
    %c0_i32 = arith.constant 0 : i32
    %c0_i32_0 = arith.constant 0 : i32
    return %arg0, %c0_i32 : i32, i32
  }
  func.func @transform_2(%arg0: i32, %arg1: i32) -> (i32, i32) {
    %c0_i32 = arith.constant 0 : i32
    %c0_i32_0 = arith.constant 0 : i32
    return %arg0, %c0_i32 : i32, i32
  }
  func.func @transform_3(%arg0: i32, %arg1: i32) -> (i32, i32) {
    %c0_i32 = arith.constant 0 : i32
    %c0_i32_0 = arith.constant 0 : i32
    %c0_i32_1 = arith.constant 0 : i32
    return %c0_i32, %c0_i32_0 : i32, i32
  }
  func.func @transform_4(%arg0: i32, %arg1: i32) -> (i32, i32, i32) {
    %c0_i32 = arith.constant 0 : i32
    %c0_i32_0 = arith.constant 0 : i32
    return %arg1, %arg0, %c0_i32 : i32, i32, i32
  }
  func.func @transform_5(%arg0: i32, %arg1: i32) -> (i32, i32) {
    %c0_i32 = arith.constant 0 : i32
    %c0_i32_0 = arith.constant 0 : i32
    return %arg0, %c0_i32 : i32, i32
  }
  func.func @transform_6(%arg0: i32, %arg1: i32) -> (i32, i32) {
    %c0_i32 = arith.constant 0 : i32
    %c0_i32_0 = arith.constant 0 : i32
    return %arg0, %c0_i32 : i32, i32
  }
}

</mosaic_0001>

<bundles_post_ra>
// kernel: tpu_custom_call.1
= control target key start
LH: loop header
LB: loop body
LE: loop exit
PB: predicated region body
PF: predicated region fallthrough
CT: control target
= control target key end

     0   :  { %12 = vsyncpa [#allocation5], 0  ;;  %s4817_s0 = inlined_call_operand.hbm [shape: f32[16,8,512], index: 0, kind: input, shape index: {}]   ;;  %s4818_s1 = inlined_call_operand.hbm [shape: f32[8,128], index: 1, kind: input, shape index: {}]   ;;  %s4819_s2 = inlined_call_operand.hbm [shape: f32[8,128], index: 2, kind: input, shape index: {}]   ;;  %s4820_s3 = inlined_call_operand.hbm [shape: bf16[128,512], index: 3, kind: input, shape index: {}]   ;;  %s4821_s4 = inlined_call_operand.hbm [shape: f32[16,8,128], index: 4, kind: output, shape index: {0}]   ;;  %s4822_s5 = inlined_call_operand.hbm [shape: f32[8,128], index: 5, kind: output, shape index: {1}]   ;;  %s4823_s6 = inlined_call_operand.hbm [shape: f32[8,128], index: 6, kind: output, shape index: {2}]  }
   0x1   :  { %14 = vsyncpa [#allocation5 + $0x1], 0 }
   0x2   :  { %15 = vsyncpa [#allocation8], 0 }
   0x3   :  { %16 = vsyncpa [#allocation11], 0 }
   0x4   :  { %17 = vsyncpa [#allocation6], 0 }
   0x5   :  { %19 = vsyncpa [#allocation6 + $0x1], 0 }
   0x6   :  { %20 = vsyncpa [#allocation14], 0  ;;  %s4028_s21 = smov 0   ;;  %s4030_s22 = smov 0  }
   0x7   :  { %s4032_s23 = smov 0   ;;  %s4034_s24 = smov 0  }
   0x8   :  { %s4036_s25 = smov 0   ;;  %s4038_s26 = smov 0  }
   0x9 LB: > { %s3033_s27 = sadd.s32 4294967295, %s3977_s26   ;;  %s3034_s28 = sadd.s32 4294967294, %s3977_s26   ;;  %s3977_s26 = sphi %s4038_s26, %s26_s26   ;;  %s3973_s25 = sphi %s4036_s25, %s4852_s25   ;;  %s3969_s24 = sphi %s4034_s24, %s4851_s24   ;;  %s3965_s23 = sphi %s4032_s23, %s4850_s23   ;;  %s3961_s22 = sphi %s4030_s22, %s4849_s22   ;;  %s3957_s21 = sphi %s4028_s21, %s4848_s21  }
   0xa   : > { %p60_p0 = scmp.ne.s32.totalorder %s3961_s22, %s3957_s21  ;;  %p4062_p1 = scmp.eq.s32.totalorder %s3033_s27, 0 }
   0xb   : > { %p4066_p2 = scmp.eq.s32.totalorder %s3033_s27, 1  ;;  %p165_p3 = scmp.eq.s32.totalorder %s3034_s28, 1 }
   0xc   : > { %s4830_s29 = scalar_select %p4062_p1, 1, 0 }
   0xd   : > { %s4831_s30 = scalar_select %p4066_p2, 1, 0 }
   0xe   : > { %p4072_p4 = por %p4062_p1, %p60_p0  ;;  %p3035_p5 = scmp.ge.s32.totalorder %s3977_s26, 1 }
   0xf   : > { %p4077_p6 = por %p165_p3, %p60_p0  ;;  %p224_p7 = scmp.lt.s32.totalorder %s3977_s26, 3 }
  0x10   : > { %s4832_s7 = scalar_select %p4072_p4, 1, 0 }
  0x11   : > { %s4833_s8 = scalar_select %p4077_p6, 1, 0 }
  0x12   : > { %p4082_p8 = pnand %p3035_p5, %p224_p7  ;;  %s3979_s10 = smov [#allocation7]  }
  0x13   : > { %4834 = sst [smem:[#allocation21_spill]] %s4833_s8  ;;  %s239_s11 = sshll.u32 %s3979_s10, 4  ;;  %s240_s11 = int_to_ptr.vmem [resolvable:$true] %s239_s11 }
  0x14   : > { %s4835_s9 = scalar_select %p4082_p8, 1, 0 }
  0x15   : > { %p3403_p10 = pneg %p4082_p8  ;;  %s3980_s12 = smov [#allocation9]  }
  0x16   : > { %s252_s13 = sshll.u32 %s3980_s12, 4  ;;  %s3981_s15 = smov [#allocation10]   ;;  %s4095_s13 = int_to_ptr.vmem [resolvable:$true] %s252_s13 }
  0x17   : > { %p4091_p11 = pnand %p3403_p10, %p4062_p1  ;;  %s262_s16 = sshll.u32 %s3981_s15, 4  ;;  %s4097_s16 = int_to_ptr.vmem [resolvable:$true] %s262_s16 }
  0x18   : > { %s3717_s19 = scalar_lea.hbm %s4818_s1, 128 }
  0x19   : > { %p3718_p12 = scmp.ne.s32.totalorder %s4818_s1, %s3717_s19  ;;  %p4107_p13 = pneg %p4091_p11 }
  0x1a   : > { %p3724_p5 = scmp.lt.u32.totalorder %s3717_s19, %s4818_s1 }
  0x1b   : > { %p3720_p0 = pnand %p4107_p13, %p3718_p12 }
  0x1d   : > { %p3721_p3 = pneg %p3720_p0 }
  0x1f   : > { %p3726_p7 = pnand %p3724_p5, %p3721_p3 }
  0x21   : > { %3729 = shalt.err (!%p3726_p7)
}
  0x22   : > { %s3730_s15 = scalar_lea.vmem %s240_s11, 128  ;;  %p3738_p1 = scmp.lt.s32.totalorder %s240_s11, %s240_s11 }
  0x23   : > { %p3731_p10 = scmp.ne.s32.totalorder %s240_s11, %s3730_s15  ;;  %p3739_p4 = scmp.lt.s32.totalorder %s3730_s15, %s3730_s15 }
  0x25   : > { %p3733_p9 = pnand %p3731_p10, %p4107_p13  ;;  %p3740_p8 = por %p3739_p4, %p3738_p1 }
  0x27   : > { %p3734_p6 = pneg %p3733_p9 }
  0x29   : > { %p3741_p2 = pnand %p3740_p8, %p3734_p6 }
  0x2b   : > { %3744 = shalt.err (!%p3741_p2)
}
  0x2c   : > { %3406 = dma.hbm_to_vmem [thread:$0]  (!%p4091_p11), %s4818_s1, 128, %s240_s11, [#allocation8]  }
  0x2d   : > { %s3745_s27 = scalar_lea.hbm %s4819_s2, 128 }
  0x2e   : > { %p3746_p9 = scmp.ne.s32.totalorder %s4819_s2, %s3745_s27  ;;  %p3752_p2 = scmp.lt.u32.totalorder %s3745_s27, %s4819_s2 }
  0x30   : > { %p3748_p12 = pnand %p3746_p9, %p4107_p13 }
  0x32   : > { %p3749_p1 = pneg %p3748_p12 }
  0x34   : > { %p3754_p4 = pnand %p3752_p2, %p3749_p1 }
  0x36   : > { %3757 = shalt.err (!%p3754_p4)
}
  0x37   : > { %s3758_s11 = scalar_lea.vmem %s4095_s13, 128  ;;  %p3766_p3 = scmp.lt.s32.totalorder %s4095_s13, %s4095_s13 }
  0x38   : > { %p3759_p6 = scmp.ne.s32.totalorder %s4095_s13, %s3758_s11  ;;  %p3767_p5 = scmp.lt.s32.totalorder %s3758_s11, %s3758_s11 }
  0x3a   : > { %p3761_p8 = pnand %p3759_p6, %p4107_p13  ;;  %p3768_p7 = por %p3767_p5, %p3766_p3 }
  0x3c   : > { %p3762_p0 = pneg %p3761_p8 }
  0x3e   : > { %p3769_p10 = pnand %p3768_p7, %p3762_p0 }
  0x40   : > { %3772 = shalt.err (!%p3769_p10)
}
  0x41   : > { %3409 = dma.hbm_to_vmem [thread:$0]  (!%p4091_p11), %s4819_s2, 128, %s4095_s13, [#allocation8]  }
  0x42   : > { %s3773_s20 = scalar_lea.hbm %s4820_s3, 4096 }
  0x43   : > { %p3774_p9 = scmp.ne.s32.totalorder %s4820_s3, %s3773_s20  ;;  %p3780_p2 = scmp.lt.u32.totalorder %s3773_s20, %s4820_s3 }
  0x45   : > { %p3776_p12 = pnand %p3774_p9, %p4107_p13 }
  0x47   : > { %p3777_p1 = pneg %p3776_p12 }
  0x49   : > { %p3782_p4 = pnand %p3780_p2, %p3777_p1 }
  0x4b   : > { %3785 = shalt.err (!%p3782_p4)
}
  0x4c   : > { %s3786_s13 = scalar_lea.vmem %s4097_s16, 4096  ;;  %p3794_p3 = scmp.lt.s32.totalorder %s4097_s16, %s4097_s16 }
  0x4d   : > { %p3787_p6 = scmp.ne.s32.totalorder %s4097_s16, %s3786_s13  ;;  %p3795_p5 = scmp.lt.s32.totalorder %s3786_s13, %s3786_s13 }
  0x4f   : > { %p3789_p8 = pnand %p3787_p6, %p4107_p13  ;;  %p3796_p7 = por %p3795_p5, %p3794_p3 }
  0x51   : > { %p3790_p0 = pneg %p3789_p8 }
  0x53   : > { %p3797_p10 = pnand %p3796_p7, %p3790_p0 }
  0x55   : > { %3800 = shalt.err (!%p3797_p10)
}
  0x56   : > { %s3982_s11 = smov 256   ;;  %s3983_s28 = smov 16  }
  0x57   : > { %3412 = dma.hbm_to_vmem [thread:$0]  (!%p4091_p11), %s4820_s3, 4096, %s4097_s16, [#allocation11], %s3982_s11, %s3982_s11, %s3983_s28  }
  0x58   : > { %s47_s18 = sadd.s32 1, %s3965_s23  ;;  %s35_s19 = sadd.s32 1, %s3973_s25 }
  0x59   : > { %p54_p13 = scmp.ne.s32.totalorder %s3965_s23, %s3961_s22  ;;  %p36_p9 = scmp.ge.s32.totalorder %s35_s19, 2 }
  0x5a   : > { %p55_p12 = scmp.eq.s32.totalorder %s3977_s26, 0  ;;  %p4838_p1 = scmp.ne.s32.totalorder %s4831_s30, 0 }
  0x5b   : > { %p3424_p4 = scmp.lt.s32.totalorder %s3977_s26, 2  ;;  %s4854_s19 = smov (%p36_p9, %s35_s19), 0 }
  0x5c   : > { %p4176_p2 = por %p4838_p1, %p54_p13  ;;  %p56_p6 = por %p55_p12, %p54_p13 }
  0x5d   : > { %s276_s14 = sand.u32 1, %s3965_s23   ;;  %s42_s27 = ssub.s32 %s3973_s25, %s4854_s19 }
  0x5e   : > { %p45_p8 = scmp.eq.s32.totalorder %s42_s27, 0  ;;  %s3040_s16 = sshll.u32 %s276_s14, 8 }
  0x5f   : > { %s3377_s10 = sshll.u32 %s3973_s25, 12  ;;  %s280_s28 = scalar_lea.vmem [#allocation4], %s3040_s16 }
  0x60   : > { %s4188_s12 = scalar_select %p45_p8, %s3965_s23, %s47_s18  }
  0x61   : > { %s4193_s11 = scalar_lea.hbm %s4817_s0, %s3377_s10  ;;  %s290_s8 = sshll.u32 %s280_s28, 4  ;;  %s4195_s8 = int_to_ptr.vmem [resolvable:$true] %s290_s8 }
  0x62   : > { %p4199_p11 = pnand %p3424_p4, %p56_p6  ;;  %s4203_s18 = scalar_lea.sflag [#allocation5], %s276_s14 }
  0x63   : > { %s3801_s27 = scalar_lea.hbm %s4193_s11, 4096  ;;  %s3806_s15 = scalar_lea.hbm %s4817_s0, 8192 }
  0x64   : > { %p3802_p0 = scmp.ne.s32.totalorder %s4193_s11, %s3801_s27  ;;  %p3803_p3 = pneg %p4199_p11 }
  0x65   : > { %p3807_p10 = scmp.lt.u32.totalorder %s4193_s11, %s4817_s0  ;;  %p3808_p13 = scmp.lt.u32.totalorder %s3806_s15, %s3801_s27 }
  0x66   : > { %p3804_p5 = pnand %p3803_p3, %p3802_p0  ;;  %p3810_p12 = scmp.lt.u32.totalorder %s3801_s27, %s4193_s11 }
  0x67   : > { %p3809_p9 = por %p3808_p13, %p3807_p10 }
  0x68   : > { %p3805_p7 = pneg %p3804_p5 }
  0x69   : > { %p3811_p1 = por %p3810_p12, %p3809_p9 }
  0x6b   : > { %p3812_p4 = pnand %p3811_p1, %p3805_p7 }
  0x6d   : > { %3815 = shalt.err (!%p3812_p4)
}
  0x6e   : > { %s3816_s14 = scalar_lea.vmem %s4195_s8, 4096  ;;  %s3984_s16 = smov [#allocation4]  }
  0x6f   : > { %p3817_p6 = scmp.ne.s32.totalorder %s4195_s8, %s3816_s14  ;;  %s3821_s10 = sshll.u32 %s3984_s16, 4  ;;  %s3822_s10 = int_to_ptr.vmem [resolvable:$false] %s3821_s10 }
  0x70   : > { %s3823_s13 = scalar_lea.vmem %s3822_s10, 8192  ;;  %p3824_p5 = scmp.lt.s32.totalorder %s4195_s8, %s3822_s10 }
  0x71   : > { %p3819_p8 = pnand %p3817_p6, %p3803_p3  ;;  %p3825_p10 = scmp.lt.s32.totalorder %s3823_s13, %s3816_s14 }
  0x73   : > { %p3820_p0 = pneg %p3819_p8  ;;  %p3826_p13 = por %p3825_p10, %p3824_p5 }
  0x75   : > { %p3827_p9 = pnand %p3826_p13, %p3820_p0 }
  0x77   : > { %3830 = shalt.err (!%p3827_p9)
}
  0x78   : > { %s3985_s27 = smov 512   ;;  %s3986_s15 = smov 32  }
  0x79   : > { %3416 = dma.hbm_to_vmem [thread:$0]  (!%p4199_p11), %s4193_s11, 4096, %s4195_s8, %s4203_s18, %s3985_s27, %s3985_s27, %s3986_s15  }
  0x7a   : > { %p4841_p3 = scmp.ne.s32.totalorder %s4835_s9, 0 }
  0x7b   : > { %s4234_s28 = sand.u32 (!%p4841_p3), 1, %s3961_s22   ;;  %p4842_p7 = scmp.ne.s32.totalorder (!%p4841_p3), %s4832_s7, 0 }
  0x7c   : > { %302 = sbr.rel (%p4841_p3) target bundleno = 2333 (0x91d), region = 36  ;;  %s3045_s14 = sshll.u32 (!%p4841_p3), %s4234_s28, 8 }
  0x7d   : > { %s305_s16 = scalar_lea.sflag (!%p4841_p3), [#allocation5], %s4234_s28  ;;  %s4238_s10 = scalar_lea.vmem (!%p4841_p3), [#allocation4], %s3045_s14 }
  0x83   : > { %3936 = dma.done.wait (%p4842_p7), %s305_s16, 4096  }
  0x84   : > { %3938 = vsyncadd (%p4842_p7), %s305_s16, 4294963200  ;;  %p4843_p11 = scmp.ne.s32.totalorder %s4830_s29, 0 }
  0x86   : > { %3940 = dma.done.wait (%p4843_p11), [#allocation8], 256  }
  0x87   : > { %3942 = vsyncadd (%p4843_p11), [#allocation8], 4294967040 }
  0x88   : > { %3944 = dma.done.wait (%p4843_p11), [#allocation11], 4096  }
  0x89   : > { %3946 = vsyncadd (%p4843_p11), [#allocation11], 4294963200  ;;  %s3049_s9 = sshll.u32 %s4234_s28, 6  ;;  %p3050_p12 = scmp.ne.s32.totalorder %s3969_s24, 0 }
  0x8a   : > { %s4253_s11 = scalar_lea.vmem [#allocation12], %s3049_s9  ;;  %v356_v0 = vld [vmem:[#allocation7] sm:$0xff] (!%p3050_p12)  ;;  %v358_v1 = vld [vmem:[#allocation9] sm:$0xff] (!%p3050_p12) }
  0x8b   : > { %355 = sbr.rel (%p3050_p12) target bundleno = 146 (0x92), region = 56  ;;  %357 = vst [vmem:[#allocation2] sm:$0xff] (!%p3050_p12), %v356_v0  ;;  %359 = vst [vmem:[#allocation3] sm:$0xff] (!%p3050_p12), %v358_v1 }
  0x92 PF: > { %v4256_v2 = vld [vmem:[#allocation10 + $0x4] ss:$16 sps:$4 sm:$0xff]   ;;  %v4258_v3 = vld [vmem:[#allocation10] ss:$16 sps:$4 sm:$0xff]   ;;  %v3987_v4 = vmov 0   ;;  %v363_v38 = vld [vmem:[%s4238_s10 + $0x8] sm:$0xff] }
  0x93   : > { %591 = vmatprep.mubr.bf16.mxu0 %v3987_v4  ;;  %632 = vmatprep.mubr.bf16.mxu1 %v3987_v4  ;;  %v4263_v5 = vld [vmem:[#allocation10 + $0x24] ss:$16 sps:$4 sm:$0xff]   ;;  %v4266_v6 = vld [vmem:[#allocation10 + $0x20] ss:$16 sps:$4 sm:$0xff]   ;;  %v4271_v8 = vld [vmem:[#allocation10 + $0xc] ss:$16 sps:$4 sm:$0xff]  }
  0x94   : > { %559 = vmatprep.subr.bf16.mxu0 %v4256_v2  ;;  %v4269_v7 = vld [vmem:[#allocation10 + $0x44] ss:$16 sps:$4 sm:$0xff]   ;;  %v4273_v9 = vld [vmem:[#allocation10 + $0x8] ss:$16 sps:$4 sm:$0xff]   ;;  %v4276_v10 = vld [vmem:[#allocation10 + $0x40] ss:$16 sps:$4 sm:$0xff]   ;;  %600 = vmatprep.subr.bf16.mxu1 %v4271_v8 }
  0x95   : > { %560 = vmatpush1.bf16.msra.mxu0 %v4258_v3  ;;  %v4280_v11 = vld [vmem:[#allocation10 + $0x64] ss:$16 sps:$4 sm:$0xff]   ;;  %601 = vmatpush1.bf16.msra.mxu1 %v4273_v9  ;;  %v4283_v12 = vld [vmem:[#allocation10 + $0x2c] ss:$16 sps:$4 sm:$0xff]   ;;  %v4285_v13 = vld [vmem:[#allocation10 + $0x28] ss:$16 sps:$4 sm:$0xff]  }
  0x96   : > { %561 = vmatprep.subr.bf16.mxu0 %v4263_v5  ;;  %602 = vmatprep.subr.bf16.mxu1 %v4283_v12  ;;  %v4289_v14 = vld [vmem:[#allocation10 + $0x60] ss:$16 sps:$4 sm:$0xff]   ;;  %v4291_v15 = vld [vmem:[#allocation10 + $0x84] ss:$16 sps:$4 sm:$0xff]   ;;  %v4293_v16 = vld [vmem:[#allocation10 + $0x4c] ss:$16 sps:$4 sm:$0xff]  }
  0x97   : > { %v4297_v17 = vld [vmem:[#allocation10 + $0x48] ss:$16 sps:$4 sm:$0xff]   ;;  %v4300_v18 = vld [vmem:[#allocation10 + $0x6c] ss:$16 sps:$4 sm:$0xff]   ;;  %v4303_v19 = vld [vmem:[#allocation10 + $0x80] ss:$16 sps:$4 sm:$0xff]  }
  0x98   : > { %v4306_v20 = vld [vmem:[#allocation10 + $0xa4] ss:$16 sps:$4 sm:$0xff]   ;;  %v4309_v21 = vld [vmem:[#allocation10 + $0x68] ss:$16 sps:$4 sm:$0xff]   ;;  %v4312_v22 = vld [vmem:[#allocation10 + $0x8c] ss:$16 sps:$4 sm:$0xff]  }
  0x99   : > { %562 = vmatpush1.bf16.msra.mxu0 %v4266_v6  ;;  %603 = vmatpush1.bf16.msra.mxu1 %v4285_v13  ;;  %v4314_v23 = vld [vmem:[#allocation10 + $0xa0] ss:$16 sps:$4 sm:$0xff]   ;;  %v4317_v24 = vld [vmem:[#allocation10 + $0xc4] ss:$16 sps:$4 sm:$0xff]   ;;  %v4321_v25 = vld [vmem:[#allocation10 + $0x88] ss:$16 sps:$4 sm:$0xff]  }
  0x9a   : > { %563 = vmatprep.subr.bf16.mxu0 %v4269_v7  ;;  %604 = vmatprep.subr.bf16.mxu1 %v4293_v16  ;;  %v4323_v26 = vld [vmem:[#allocation10 + $0xc0] ss:$16 sps:$4 sm:$0xff]   ;;  %v4326_v27 = vld [vmem:[#allocation10 + $0xac] ss:$16 sps:$4 sm:$0xff]   ;;  %v4328_v28 = vld [vmem:[#allocation10 + $0xe4] ss:$16 sps:$4 sm:$0xff]  }
  0x9b   : > { %v4330_v29 = vld [vmem:[#allocation10 + $0xa8] ss:$16 sps:$4 sm:$0xff]   ;;  %v4333_v30 = vld [vmem:[#allocation10 + $0xcc] ss:$16 sps:$4 sm:$0xff]   ;;  %v4337_v31 = vld [vmem:[#allocation10 + $0xe0] ss:$16 sps:$4 sm:$0xff]  }
  0x9c   : > { %v360_v32 = vld [vmem:[#allocation2] sm:$0xff]  ;;  %v4340_v33 = vld [vmem:[#allocation10 + $0xc8] ss:$16 sps:$4 sm:$0xff]   ;;  %v4343_v34 = vld [vmem:[#allocation10 + $0xec] ss:$16 sps:$4 sm:$0xff]   ;;  %p3366_p1 = scmp.ne.s32.totalorder %s3969_s24, 1 }
  0x9d   : > { %564 = vmatpush1.bf16.msra.mxu0 %v4276_v10  ;;  %605 = vmatpush1.bf16.msra.mxu1 %v4297_v17  ;;  %v366_v35 = vpack.c.bf16 %v360_v32, %v360_v32  ;;  %v4350_v36 = vld [vmem:[#allocation10 + $0xe8] ss:$16 sps:$4 sm:$0xff]   ;;  %v362_v37 = vld [vmem:[%s4238_s10] sm:$0xff]  ;;  %v364_v53 = vld [vmem:[%s4238_s10 + $0x10] sm:$0xff] }
  0x9e   : > { %565 = vmatprep.subr.bf16.mxu0 %v4280_v11  ;;  %606 = vmatprep.subr.bf16.mxu1 %v4300_v18  ;;  %v365_v47 = vld [vmem:[%s4238_s10 + $0x18] sm:$0xff] }
  0x9f   : > { %v361_v62 = vld [vmem:[#allocation3] sm:$0xff] }
  0xa1   : > { %566 = vmatpush1.bf16.msra.mxu0 %v4289_v14  ;;  %607 = vmatpush1.bf16.msra.mxu1 %v4309_v21 }
  0xa2   : > { %567 = vmatprep.subr.bf16.mxu0 %v4291_v15  ;;  %608 = vmatprep.subr.bf16.mxu1 %v4312_v22 }
  0xa5   : > { %568 = vmatpush1.bf16.msra.mxu0 %v4303_v19  ;;  %609 = vmatpush1.bf16.msra.mxu1 %v4321_v25 }
  0xa6   : > { %569 = vmatprep.subr.bf16.mxu0 %v4306_v20  ;;  %610 = vmatprep.subr.bf16.mxu1 %v4326_v27 }
  0xa9   : > { %570 = vmatpush1.bf16.msra.mxu0 %v4314_v23  ;;  %611 = vmatpush1.bf16.msra.mxu1 %v4330_v29 }
  0xaa   : > { %571 = vmatprep.subr.bf16.mxu0 %v4317_v24  ;;  %612 = vmatprep.subr.bf16.mxu1 %v4333_v30 }
  0xad   : > { %572 = vmatpush1.bf16.msra.mxu0 %v4323_v26  ;;  %613 = vmatpush1.bf16.msra.mxu1 %v4340_v33 }
  0xae   : > { %573 = vmatprep.subr.bf16.mxu0 %v4328_v28  ;;  %614 = vmatprep.subr.bf16.mxu1 %v4343_v34 }
  0xb1   : > { %574 = vmatpush1.bf16.msra.mxu0 %v4337_v31  ;;  %615 = vmatpush1.bf16.msra.mxu1 %v4350_v36 }
  0xb2   : > { %868 = vmatprep.subr.bf16.mxu0 %v4256_v2  ;;  %909 = vmatprep.subr.bf16.mxu1 %v4271_v8 }
  0xb4   : > { %592 = vmatmul.mubr.bf16.vlgmr.msra.gmra.mrb[0].mxu0 %v366_v35  ;;  %633 = vmatmul.mubr.bf16.vlgmr.msra.gmra.mrb[0].mxu1 %v366_v35 }
  0xb5   : > { %869 = vmatpush1.bf16.msra.mxu0 %v4258_v3  ;;  %900 = vmatprep.mubr.bf16.mxu0 %v3987_v4 }
  0xb6   : > { %870 = vmatprep.subr.bf16.mxu0 %v4263_v5  ;;  %910 = vmatpush1.bf16.msra.mxu1 %v4273_v9 }
  0xb7   : > { %911 = vmatprep.subr.bf16.mxu1 %v4283_v12  ;;  %941 = vmatprep.mubr.bf16.mxu1 %v3987_v4 }
  0xb9   : > { %871 = vmatpush1.bf16.msra.mxu0 %v4266_v6 }
  0xba   : > { %872 = vmatprep.subr.bf16.mxu0 %v4269_v7  ;;  %912 = vmatpush1.bf16.msra.mxu1 %v4285_v13 }
  0xbb   : > { %913 = vmatprep.subr.bf16.mxu1 %v4293_v16 }
  0xbd   : > { %873 = vmatpush1.bf16.msra.mxu0 %v4276_v10 }
  0xbe   : > { %874 = vmatprep.subr.bf16.mxu0 %v4280_v11  ;;  %914 = vmatpush1.bf16.msra.mxu1 %v4297_v17 }
  0xbf   : > { %915 = vmatprep.subr.bf16.mxu1 %v4300_v18 }
  0xc1   : > { %875 = vmatpush1.bf16.msra.mxu0 %v4289_v14 }
  0xc2   : > { %876 = vmatprep.subr.bf16.mxu0 %v4291_v15  ;;  %916 = vmatpush1.bf16.msra.mxu1 %v4309_v21 }
  0xc3   : > { %917 = vmatprep.subr.bf16.mxu1 %v4312_v22 }
  0xc5   : > { %877 = vmatpush1.bf16.msra.mxu0 %v4303_v19 }
  0xc6   : > { %878 = vmatprep.subr.bf16.mxu0 %v4306_v20  ;;  %918 = vmatpush1.bf16.msra.mxu1 %v4321_v25 }
  0xc7   : > { %919 = vmatprep.subr.bf16.mxu1 %v4326_v27 }
  0xc9   : > { %879 = vmatpush1.bf16.msra.mxu0 %v4314_v23 }
  0xca   : > { %880 = vmatprep.subr.bf16.mxu0 %v4317_v24  ;;  %920 = vmatpush1.bf16.msra.mxu1 %v4330_v29 }
  0xcb   : > { %921 = vmatprep.subr.bf16.mxu1 %v4333_v30 }
  0xcd   : > { %881 = vmatpush1.bf16.msra.mxu0 %v4323_v26 }
  0xce   : > { %882 = vmatprep.subr.bf16.mxu0 %v4328_v28  ;;  %922 = vmatpush1.bf16.msra.mxu1 %v4340_v33 }
  0xcf   : > { %923 = vmatprep.subr.bf16.mxu1 %v4343_v34 }
  0xd1   : > { %883 = vmatpush1.bf16.msra.mxu0 %v4337_v31 }
  0xd2   : > { %1178 = vmatprep.subr.bf16.mxu0 %v4256_v2  ;;  %924 = vmatpush1.bf16.msra.mxu1 %v4350_v36 }
  0xd3   : > { %1219 = vmatprep.subr.bf16.mxu1 %v4271_v8 }
 0x187   : > { %v593_v39 = vpop.f32.mrb[0].mxu0  ;;  %v634_v48 = vpop.f32.mrb[0].mxu1 }
 0x188   : > { %v641_v40 = vadd.f32 %v593_v39, %v362_v37  ;;  %v595_v41 = vpop.f32.mrb[1].mxu0  ;;  %v636_v49 = vpop.f32.mrb[1].mxu1  ;;  %v643_v55 = vadd.f32 %v634_v48, %v364_v53 }
 0x189   : > { %v642_v42 = vadd.f32 %v595_v41, %v363_v38  ;;  %v597_v43 = vpop.f32.mrb[2].mxu0  ;;  %v644_v50 = vadd.f32 %v636_v49, %v365_v47  ;;  %v638_v51 = vpop.f32.mrb[2].mxu1 }
 0x18a   : > { %v3083_v44 = vmul.f32 -1.442695, %v641_v40  ;;  %v598_v45 = vpop.f32.mrb[3].mxu0  ;;  %v639_v52 = vpop.f32.mrb[3].mxu1  ;;  %v3087_v43 = vld [vmem:[%s4238_s10 + $0x28] sm:$0xff] }
 0x18b   : > { %v3084_v46 = vmul.f32 -1.442695, %v642_v42  ;;  %v3085_v54 = vmul.f32 -1.442695, %v644_v50  ;;  %v3086_v42 = vld [vmem:[%s4238_s10 + $0x20] sm:$0xff] }
 0x18c   : > { %3589 = vpow2.f32 %v3083_v44 }
 0x18d   : > { %3591 = vpow2.f32 %v3084_v46 }
 0x18e   : > { %3593 = vpow2.f32 %v3085_v54 }
 0x18f   : > { %3595 = vtanh.f32 %v643_v55 }
 0x196   : > { %v3590_v56 = vpop.eup %3589 }
 0x197   : > { %v3592_v57 = vpop.eup %3591  ;;  %v648_v58 = vadd.f32 1.0, %v3590_v56  ;;  %v3088_v56 = vld [vmem:[%s4238_s10 + $0x30] sm:$0xff] }
 0x198   : > { %v654_v59 = vadd.f32 1.0, %v3592_v57  ;;  %v3594_v60 = vpop.eup %3593 }
 0x199   : > { %3597 = vrcp.f32 %v648_v58  ;;  %v3596_v61 = vpop.eup %3595  ;;  %v661_v0 = vadd.f32 1.0, %v3594_v60 }
 0x19a   : > { %3599 = vrcp.f32 %v654_v59 }
 0x19b   : > { %3601 = vrcp.f32 %v661_v0 }
 0x1a3   : > { %v3598_v63 = vpop.eup %3597 }
 0x1a4   : > { %v3600_v1 = vpop.eup %3599  ;;  %v665_v32 = vmul.f32 %v3598_v63, %v3596_v61 }
 0x1a5   : > { %v664_v35 = vmul.f32 %v3600_v1, %v361_v62  ;;  %v3602_v38 = vpop.eup %3601 }
 0x1a7   : > { %v4394_v37 = vadd.f32 %v665_v32, %v664_v35 }
 0x1a9   : > { %3603 = vtanh.f32 %v4394_v37 }
 0x1b3   : > { %v3604_v39 = vpop.eup %3603 }
 0x1b4   : > { %v668_v40 = vmul.f32 %v3604_v39, %v3602_v38 }
 0x1b6   : > { %669 = vst [vmem:[%s4253_s11] sm:$0xff] %v668_v40  ;;  %v675_v41 = vpack.c.bf16 %v668_v40, %v668_v40 }
 0x1b8   : > { %901 = vmatmul.mubr.bf16.vlgmr.msra.gmra.mrb[4].mxu0 %v675_v41  ;;  %942 = vmatmul.mubr.bf16.vlgmr.msra.gmra.mrb[4].mxu1 %v675_v41 }
 0x1b9   : > { %1179 = vmatpush1.bf16.msra.mxu0 %v4258_v3  ;;  %1220 = vmatpush1.bf16.msra.mxu1 %v4273_v9 }
 0x1ba   : > { %1180 = vmatprep.subr.bf16.mxu0 %v4263_v5  ;;  %1221 = vmatprep.subr.bf16.mxu1 %v4283_v12 }
 0x1bb   : > { %1210 = vmatprep.mubr.bf16.mxu0 %v3987_v4  ;;  %1251 = vmatprep.mubr.bf16.mxu1 %v3987_v4 }
 0x1bd   : > { %1181 = vmatpush1.bf16.msra.mxu0 %v4266_v6  ;;  %1222 = vmatpush1.bf16.msra.mxu1 %v4285_v13 }
 0x1be   : > { %1182 = vmatprep.subr.bf16.mxu0 %v4269_v7  ;;  %1223 = vmatprep.subr.bf16.mxu1 %v4293_v16 }
 0x1c1   : > { %1183 = vmatpush1.bf16.msra.mxu0 %v4276_v10  ;;  %1224 = vmatpush1.bf16.msra.mxu1 %v4297_v17 }
 0x1c2   : > { %1184 = vmatprep.subr.bf16.mxu0 %v4280_v11  ;;  %1225 = vmatprep.subr.bf16.mxu1 %v4300_v18 }
 0x1c5   : > { %1185 = vmatpush1.bf16.msra.mxu0 %v4289_v14  ;;  %1226 = vmatpush1.bf16.msra.mxu1 %v4309_v21 }
 0x1c6   : > { %1186 = vmatprep.subr.bf16.mxu0 %v4291_v15  ;;  %1227 = vmatprep.subr.bf16.mxu1 %v4312_v22 }
 0x1c9   : > { %1187 = vmatpush1.bf16.msra.mxu0 %v4303_v19  ;;  %1228 = vmatpush1.bf16.msra.mxu1 %v4321_v25 }
 0x1ca   : > { %1188 = vmatprep.subr.bf16.mxu0 %v4306_v20  ;;  %1229 = vmatprep.subr.bf16.mxu1 %v4326_v27 }
 0x1cd   : > { %1189 = vmatpush1.bf16.msra.mxu0 %v4314_v23  ;;  %1230 = vmatpush1.bf16.msra.mxu1 %v4330_v29 }
 0x1ce   : > { %1190 = vmatprep.subr.bf16.mxu0 %v4317_v24  ;;  %1231 = vmatprep.subr.bf16.mxu1 %v4333_v30 }
 0x1d1   : > { %1191 = vmatpush1.bf16.msra.mxu0 %v4323_v26  ;;  %1232 = vmatpush1.bf16.msra.mxu1 %v4340_v33 }
 0x1d2   : > { %1192 = vmatprep.subr.bf16.mxu0 %v4328_v28  ;;  %1233 = vmatprep.subr.bf16.mxu1 %v4343_v34 }
 0x1d5   : > { %1193 = vmatpush1.bf16.msra.mxu0 %v4337_v31  ;;  %1234 = vmatpush1.bf16.msra.mxu1 %v4350_v36 }
 0x1d6   : > { %1488 = vmatprep.subr.bf16.mxu0 %v4256_v2  ;;  %1529 = vmatprep.subr.bf16.mxu1 %v4271_v8  ;;  %v3089_v2 = vld [vmem:[%s4238_s10 + $0x38] sm:$0xff] }
 0x28b   : > { %v902_v44 = vpop.f32.mrb[4].mxu0  ;;  %v943_v45 = vpop.f32.mrb[4].mxu1 }
 0x28c   : > { %v950_v46 = vadd.f32 %v3086_v42, %v902_v44  ;;  %v904_v47 = vpop.f32.mrb[5].mxu0  ;;  %v945_v48 = vpop.f32.mrb[5].mxu1  ;;  %v952_v58 = vadd.f32 %v3088_v56, %v943_v45  ;;  %v4510_v56 = vld [vmem:[#allocation10 + $0x4c] ss:$16 sps:$4 sm:$0xff]  }
 0x28d   : > { %v951_v49 = vadd.f32 %v3087_v43, %v904_v47  ;;  %v906_v50 = vpop.f32.mrb[6].mxu0  ;;  %v947_v51 = vpop.f32.mrb[6].mxu1  ;;  %v953_v8 = vadd.f32 %v3089_v2, %v945_v48  ;;  %v4502_v2 = vld [vmem:[#allocation10 + $0x28] ss:$16 sps:$4 sm:$0xff]  }
 0x28e   : > { %v3122_v52 = vmul.f32 -1.442695, %v950_v46  ;;  %v907_v53 = vpop.f32.mrb[7].mxu0  ;;  %v948_v54 = vpop.f32.mrb[7].mxu1  ;;  %v4486_v50 = vld [vmem:[#allocation10 + $0xc] ss:$16 sps:$4 sm:$0xff]  }
 0x28f   : > { %v3123_v55 = vmul.f32 -1.442695, %v951_v49  ;;  %v3124_v57 = vmul.f32 -1.442695, %v953_v8  ;;  %v4484_v49 = vld [vmem:[#allocation10 + $0x4] ss:$16 sps:$4 sm:$0xff]  }
 0x290   : > { %3605 = vpow2.f32 %v3122_v52  ;;  %v4488_v51 = vld [vmem:[#allocation10] ss:$16 sps:$4 sm:$0xff]   ;;  %v4490_v52 = vld [vmem:[#allocation10 + $0x8] ss:$16 sps:$4 sm:$0xff]   ;;  %v4496_v53 = vld [vmem:[#allocation10 + $0x24] ss:$16 sps:$4 sm:$0xff]  }
 0x291   : > { %3607 = vpow2.f32 %v3123_v55  ;;  %v4498_v54 = vld [vmem:[#allocation10 + $0x2c] ss:$16 sps:$4 sm:$0xff]   ;;  %v4500_v55 = vld [vmem:[#allocation10 + $0x20] ss:$16 sps:$4 sm:$0xff]   ;;  %v4508_v8 = vld [vmem:[#allocation10 + $0x44] ss:$16 sps:$4 sm:$0xff]  }
 0x292   : > { %3609 = vpow2.f32 %v3124_v57  ;;  %v4512_v57 = vld [vmem:[#allocation10 + $0x40] ss:$16 sps:$4 sm:$0xff]  }
 0x293   : > { %3611 = vtanh.f32 %v952_v58  ;;  %v4514_v58 = vld [vmem:[#allocation10 + $0x48] ss:$16 sps:$4 sm:$0xff]  }
 0x29a   : > { %v3606_v59 = vpop.eup %3605 }
 0x29b   : > { %v3608_v60 = vpop.eup %3607  ;;  %v957_v61 = vadd.f32 1.0, %v3606_v59  ;;  %v4520_v59 = vld [vmem:[#allocation10 + $0x64] ss:$16 sps:$4 sm:$0xff]  }
 0x29c   : > { %v963_v62 = vadd.f32 1.0, %v3608_v60  ;;  %v3610_v63 = vpop.eup %3609  ;;  %v4522_v60 = vld [vmem:[#allocation10 + $0x6c] ss:$16 sps:$4 sm:$0xff]  }
 0x29d   : > { %3613 = vrcp.f32 %v957_v61  ;;  %v3612_v0 = vpop.eup %3611  ;;  %v970_v38 = vadd.f32 1.0, %v3610_v63  ;;  %v4524_v61 = vld [vmem:[#allocation10 + $0x60] ss:$16 sps:$4 sm:$0xff]   ;;  %v4532_v63 = vld [vmem:[#allocation10 + $0x84] ss:$16 sps:$4 sm:$0xff]  }
 0x29e   : > { %3615 = vrcp.f32 %v963_v62  ;;  %v4526_v62 = vld [vmem:[#allocation10 + $0x68] ss:$16 sps:$4 sm:$0xff]  }
 0x29f   : > { %3617 = vrcp.f32 %v970_v38  ;;  %v4546_v38 = vld [vmem:[#allocation10 + $0xa0] ss:$16 sps:$4 sm:$0xff]  }
 0x2a7   : > { %v3614_v1 = vpop.eup %3613 }
 0x2a8   : > { %v3616_v32 = vpop.eup %3615  ;;  %v974_v35 = vmul.f32 %v3614_v1, %v3612_v0  ;;  %v4534_v0 = vld [vmem:[#allocation10 + $0x8c] ss:$16 sps:$4 sm:$0xff]   ;;  %v4536_v1 = vld [vmem:[#allocation10 + $0x80] ss:$16 sps:$4 sm:$0xff]  }
 0x2a9   : > { %v973_v39 = vmul.f32 %v3616_v32, %v4394_v37  ;;  %v3618_v41 = vpop.eup %3617  ;;  %v4538_v32 = vld [vmem:[#allocation10 + $0x88] ss:$16 sps:$4 sm:$0xff]  }
 0x2ab   : > { %v4437_v40 = vadd.f32 %v974_v35, %v973_v39  ;;  %v4542_v35 = vld [vmem:[#allocation10 + $0xa4] ss:$16 sps:$4 sm:$0xff]   ;;  %v4548_v39 = vld [vmem:[#allocation10 + $0xa8] ss:$16 sps:$4 sm:$0xff]  }
 0x2ad   : > { %3619 = vtanh.f32 %v4437_v40 }
 0x2b7   : > { %v3620_v42 = vpop.eup %3619 }
 0x2b8   : > { %v977_v43 = vmul.f32 %v3620_v42, %v3618_v41  ;;  %v4553_v41 = vld [vmem:[#allocation10 + $0xc4] ss:$16 sps:$4 sm:$0xff]   ;;  %v4555_v42 = vld [vmem:[#allocation10 + $0xcc] ss:$16 sps:$4 sm:$0xff]  }
 0x2ba   : > { %3125 = vst [vmem:[%s4253_s11 + $0x8] sm:$0xff] %v977_v43  ;;  %v985_v44 = vpack.c.bf16 %v977_v43, %v977_v43  ;;  %v4560_v43 = vld [vmem:[#allocation10 + $0xc0] ss:$16 sps:$4 sm:$0xff]  }
 0x2bc   : > { %1211 = vmatmul.mubr.bf16.vlgmr.msra.gmra.mrb[8].mxu0 %v985_v44  ;;  %1252 = vmatmul.mubr.bf16.vlgmr.msra.gmra.mrb[8].mxu1 %v985_v44  ;;  %v4562_v44 = vld [vmem:[#allocation10 + $0xc8] ss:$16 sps:$4 sm:$0xff]  }
 0x2bd   : > { %1489 = vmatpush1.bf16.msra.mxu0 %v4258_v3  ;;  %1530 = vmatpush1.bf16.msra.mxu1 %v4273_v9  ;;  %v3126_v3 = vld [vmem:[%s4238_s10 + $0x40] sm:$0xff] }
 0x2be   : > { %1490 = vmatprep.subr.bf16.mxu0 %v4263_v5  ;;  %1531 = vmatprep.subr.bf16.mxu1 %v4283_v12  ;;  %v3127_v5 = vld [vmem:[%s4238_s10 + $0x48] sm:$0xff] }
 0x2bf   : > { %1520 = vmatprep.mubr.bf16.mxu0 %v3987_v4  ;;  %1561 = vmatprep.mubr.bf16.mxu1 %v3987_v4 }
 0x2c1   : > { %1491 = vmatpush1.bf16.msra.mxu0 %v4266_v6  ;;  %1532 = vmatpush1.bf16.msra.mxu1 %v4285_v13 }
 0x2c2   : > { %1492 = vmatprep.subr.bf16.mxu0 %v4269_v7  ;;  %1533 = vmatprep.subr.bf16.mxu1 %v4293_v16 }
 0x2c5   : > { %1493 = vmatpush1.bf16.msra.mxu0 %v4276_v10  ;;  %1534 = vmatpush1.bf16.msra.mxu1 %v4297_v17 }
 0x2c6   : > { %1494 = vmatprep.subr.bf16.mxu0 %v4280_v11  ;;  %1535 = vmatprep.subr.bf16.mxu1 %v4300_v18 }
 0x2c9   : > { %1495 = vmatpush1.bf16.msra.mxu0 %v4289_v14  ;;  %1536 = vmatpush1.bf16.msra.mxu1 %v4309_v21  ;;  %v3128_v21 = vld [vmem:[%s4238_s10 + $0x50] sm:$0xff] }
 0x2ca   : > { %1496 = vmatprep.subr.bf16.mxu0 %v4291_v15  ;;  %1537 = vmatprep.subr.bf16.mxu1 %v4312_v22 }
 0x2cd   : > { %1497 = vmatpush1.bf16.msra.mxu0 %v4303_v19  ;;  %1538 = vmatpush1.bf16.msra.mxu1 %v4321_v25  ;;  %v3129_v19 = vld [vmem:[%s4238_s10 + $0x58] sm:$0xff] }
 0x2ce   : > { %1498 = vmatprep.subr.bf16.mxu0 %v4306_v20  ;;  %1539 = vmatprep.subr.bf16.mxu1 %v4326_v27 }
 0x2d1   : > { %1499 = vmatpush1.bf16.msra.mxu0 %v4314_v23  ;;  %1540 = vmatpush1.bf16.msra.mxu1 %v4330_v29 }
 0x2d2   : > { %1500 = vmatprep.subr.bf16.mxu0 %v4317_v24  ;;  %1541 = vmatprep.subr.bf16.mxu1 %v4333_v30 }
 0x2d5   : > { %1501 = vmatpush1.bf16.msra.mxu0 %v4323_v26  ;;  %1542 = vmatpush1.bf16.msra.mxu1 %v4340_v33 }
 0x2d6   : > { %1502 = vmatprep.subr.bf16.mxu0 %v4328_v28  ;;  %1543 = vmatprep.subr.bf16.mxu1 %v4343_v34 }
 0x2d9   : > { %1503 = vmatpush1.bf16.msra.mxu0 %v4337_v31  ;;  %1544 = vmatpush1.bf16.msra.mxu1 %v4350_v36 }
 0x2da   : > { %1798 = vmatprep.subr.bf16.mxu0 %v4484_v49  ;;  %1839 = vmatprep.subr.bf16.mxu1 %v4486_v50 }
 0x38f   : > { %v1212_v6 = vpop.f32.mrb[8].mxu0  ;;  %v1253_v7 = vpop.f32.mrb[8].mxu1 }
 0x390   : > { %v1260_v9 = vadd.f32 %v3126_v3, %v1212_v6  ;;  %v1214_v10 = vpop.f32.mrb[9].mxu0  ;;  %v1255_v11 = vpop.f32.mrb[9].mxu1  ;;  %v1262_v23 = vadd.f32 %v3128_v21, %v1253_v7  ;;  %v4566_v3 = vld [vmem:[#allocation10 + $0xe4] ss:$16 sps:$4 sm:$0xff]   ;;  %v4572_v6 = vld [vmem:[#allocation10 + $0xe0] ss:$16 sps:$4 sm:$0xff]  }
 0x391   : > { %v1261_v12 = vadd.f32 %v3127_v5, %v1214_v10  ;;  %v1216_v13 = vpop.f32.mrb[10].mxu0  ;;  %v1257_v14 = vpop.f32.mrb[10].mxu1  ;;  %v1263_v20 = vadd.f32 %v3129_v19, %v1255_v11  ;;  %v4568_v5 = vld [vmem:[#allocation10 + $0xec] ss:$16 sps:$4 sm:$0xff]   ;;  %v4574_v7 = vld [vmem:[#allocation10 + $0xe8] ss:$16 sps:$4 sm:$0xff]  }
 0x392   : > { %v3162_v15 = vmul.f32 -1.442695, %v1260_v9  ;;  %v1217_v16 = vpop.f32.mrb[11].mxu0  ;;  %v1258_v17 = vpop.f32.mrb[11].mxu1  ;;  %v3166_v9 = vld [vmem:[%s4238_s10 + $0x60] sm:$0xff]  ;;  %v3167_v10 = vld [vmem:[%s4238_s10 + $0x68] sm:$0xff] }
 0x393   : > { %v3163_v18 = vmul.f32 -1.442695, %v1261_v12  ;;  %v3164_v22 = vmul.f32 -1.442695, %v1263_v20 }
 0x394   : > { %3621 = vpow2.f32 %v3162_v15 }
 0x395   : > { %3623 = vpow2.f32 %v3163_v18 }
 0x396   : > { %3625 = vpow2.f32 %v3164_v22 }
 0x397   : > { %3627 = vtanh.f32 %v1262_v23  ;;  %v3169_v23 = vld [vmem:[%s4238_s10 + $0x78] sm:$0xff] }
 0x39e   : > { %v3622_v24 = vpop.eup %3621 }
 0x39f   : > { %v3624_v25 = vpop.eup %3623  ;;  %v1267_v26 = vadd.f32 1.0, %v3622_v24 }
 0x3a0   : > { %v1273_v27 = vadd.f32 1.0, %v3624_v25  ;;  %v3626_v28 = vpop.eup %3625  ;;  %v3168_v25 = vld [vmem:[%s4238_s10 + $0x70] sm:$0xff] }
 0x3a1   : > { %3629 = vrcp.f32 %v1267_v26  ;;  %v3628_v29 = vpop.eup %3627  ;;  %v1280_v34 = vadd.f32 1.0, %v3626_v28 }
 0x3a2   : > { %3631 = vrcp.f32 %v1273_v27 }
 0x3a3   : > { %3633 = vrcp.f32 %v1280_v34 }
 0x3ab   : > { %v3630_v30 = vpop.eup %3629 }
 0x3ac   : > { %v3632_v31 = vpop.eup %3631  ;;  %v1284_v33 = vmul.f32 %v3630_v30, %v3628_v29 }
 0x3ad   : > { %v1283_v36 = vmul.f32 %v3632_v31, %v4437_v40  ;;  %v3634_v45 = vpop.eup %3633  ;;  %v4550_v40 = vld [vmem:[#allocation10 + $0xac] ss:$16 sps:$4 sm:$0xff]  }
 0x3af   : > { %v4478_v37 = vadd.f32 %v1284_v33, %v1283_v36 }
 0x3b1   : > { %3635 = vtanh.f32 %v4478_v37 }
 0x3bb   : > { %v3636_v46 = vpop.eup %3635 }
 0x3bc   : > { %v1287_v47 = vmul.f32 %v3636_v46, %v3634_v45 }
 0x3be   : > { %3165 = vst [vmem:[%s4253_s11 + $0x10] sm:$0xff] %v1287_v47  ;;  %v1295_v48 = vpack.c.bf16 %v1287_v47, %v1287_v47 }
 0x3c0   : > { %1521 = vmatmul.mubr.bf16.vlgmr.msra.gmra.mrb[12].mxu0 %v1295_v48  ;;  %1562 = vmatmul.mubr.bf16.vlgmr.msra.gmra.mrb[12].mxu1 %v1295_v48 }
 0x3c1   : > { %1830 = vmatprep.mubr.bf16.mxu0 %v3987_v4  ;;  %1871 = vmatprep.mubr.bf16.mxu1 %v3987_v4 }
 0x3c2   : > { %1799 = vmatpush1.bf16.msra.mxu0 %v4488_v51  ;;  %1840 = vmatpush1.bf16.msra.mxu1 %v4490_v52 }
 0x3c3   : > { %1800 = vmatprep.subr.bf16.mxu0 %v4496_v53  ;;  %1841 = vmatprep.subr.bf16.mxu1 %v4498_v54 }
 0x3c6   : > { %1801 = vmatpush1.bf16.msra.mxu0 %v4500_v55  ;;  %1842 = vmatpush1.bf16.msra.mxu1 %v4502_v2 }
 0x3c7   : > { %1802 = vmatprep.subr.bf16.mxu0 %v4508_v8  ;;  %1843 = vmatprep.subr.bf16.mxu1 %v4510_v56 }
 0x3ca   : > { %1803 = vmatpush1.bf16.msra.mxu0 %v4512_v57  ;;  %1844 = vmatpush1.bf16.msra.mxu1 %v4514_v58 }
 0x3cb   : > { %1804 = vmatprep.subr.bf16.mxu0 %v4520_v59  ;;  %1845 = vmatprep.subr.bf16.mxu1 %v4522_v60 }
 0x3ce   : > { %1805 = vmatpush1.bf16.msra.mxu0 %v4524_v61  ;;  %1846 = vmatpush1.bf16.msra.mxu1 %v4526_v62 }
 0x3cf   : > { %1806 = vmatprep.subr.bf16.mxu0 %v4532_v63  ;;  %1847 = vmatprep.subr.bf16.mxu1 %v4534_v0 }
 0x3d2   : > { %1807 = vmatpush1.bf16.msra.mxu0 %v4536_v1  ;;  %1848 = vmatpush1.bf16.msra.mxu1 %v4538_v32 }
 0x3d3   : > { %1808 = vmatprep.subr.bf16.mxu0 %v4542_v35  ;;  %1849 = vmatprep.subr.bf16.mxu1 %v4550_v40 }
 0x3d6   : > { %1809 = vmatpush1.bf16.msra.mxu0 %v4546_v38  ;;  %1850 = vmatpush1.bf16.msra.mxu1 %v4548_v39 }
 0x3d7   : > { %1810 = vmatprep.subr.bf16.mxu0 %v4553_v41  ;;  %1851 = vmatprep.subr.bf16.mxu1 %v4555_v42 }
 0x3da   : > { %1811 = vmatpush1.bf16.msra.mxu0 %v4560_v43  ;;  %1852 = vmatpush1.bf16.msra.mxu1 %v4562_v44 }
 0x3db   : > { %1812 = vmatprep.subr.bf16.mxu0 %v4566_v3  ;;  %1853 = vmatprep.subr.bf16.mxu1 %v4568_v5 }
 0x3de   : > { %1813 = vmatpush1.bf16.msra.mxu0 %v4572_v6  ;;  %1854 = vmatpush1.bf16.msra.mxu1 %v4574_v7 }
 0x3df   : > { %2108 = vmatprep.subr.bf16.mxu0 %v4484_v49  ;;  %2149 = vmatprep.subr.bf16.mxu1 %v4486_v50 }
 0x493   : > { %v1522_v11 = vpop.f32.mrb[12].mxu0  ;;  %v1563_v12 = vpop.f32.mrb[12].mxu1 }
 0x494   : > { %v1570_v13 = vadd.f32 %v3166_v9, %v1522_v11  ;;  %v1524_v14 = vpop.f32.mrb[13].mxu0  ;;  %v1565_v15 = vpop.f32.mrb[13].mxu1  ;;  %v1572_v27 = vadd.f32 %v3168_v25, %v1563_v12 }
 0x495   : > { %v1571_v16 = vadd.f32 %v3167_v10, %v1524_v14  ;;  %v1526_v17 = vpop.f32.mrb[14].mxu0  ;;  %v1567_v18 = vpop.f32.mrb[14].mxu1  ;;  %v1573_v24 = vadd.f32 %v3169_v23, %v1565_v15  ;;  %v3207_v14 = vld [vmem:[%s4238_s10 + $0x88] sm:$0xff] }
 0x496   : > { %v3202_v19 = vmul.f32 -1.442695, %v1570_v13  ;;  %v1527_v20 = vpop.f32.mrb[15].mxu0  ;;  %v1568_v21 = vpop.f32.mrb[15].mxu1 }
 0x497   : > { %v3203_v22 = vmul.f32 -1.442695, %v1571_v16  ;;  %v3204_v26 = vmul.f32 -1.442695, %v1573_v24 }
 0x498   : > { %3637 = vpow2.f32 %v3202_v19 }
 0x499   : > { %3639 = vpow2.f32 %v3203_v22 }
 0x49a   : > { %3641 = vpow2.f32 %v3204_v26 }
 0x49b   : > { %3643 = vtanh.f32 %v1572_v27  ;;  %v3209_v27 = vld [vmem:[%s4238_s10 + $0x98] sm:$0xff] }
 0x4a2   : > { %v3638_v28 = vpop.eup %3637 }
 0x4a3   : > { %v3640_v29 = vpop.eup %3639  ;;  %v1577_v30 = vadd.f32 1.0, %v3638_v28 }
 0x4a4   : > { %v1583_v31 = vadd.f32 1.0, %v3640_v29  ;;  %v3642_v33 = vpop.eup %3641  ;;  %v3208_v29 = vld [vmem:[%s4238_s10 + $0x90] sm:$0xff] }
 0x4a5   : > { %3645 = vrcp.f32 %v1577_v30  ;;  %v3644_v34 = vpop.eup %3643  ;;  %v1590_v47 = vadd.f32 1.0, %v3642_v33 }
 0x4a6   : > { %3647 = vrcp.f32 %v1583_v31 }
 0x4a7   : > { %3649 = vrcp.f32 %v1590_v47 }
 0x4af   : > { %v3646_v36 = vpop.eup %3645 }
 0x4b0   : > { %v3648_v45 = vpop.eup %3647  ;;  %v1594_v46 = vmul.f32 %v3646_v36, %v3644_v34 }
 0x4b1   : > { %v1593_v48 = vmul.f32 %v3648_v45, %v4478_v37  ;;  %v3650_v10 = vpop.eup %3649  ;;  %v3206_v37 = vld [vmem:[%s4238_s10 + $0x80] sm:$0xff] }
 0x4b3   : > { %v4587_v9 = vadd.f32 %v1594_v46, %v1593_v48 }
 0x4b5   : > { %3651 = vtanh.f32 %v4587_v9 }
 0x4bf   : > { %v3652_v11 = vpop.eup %3651 }
 0x4c0   : > { %v1597_v12 = vmul.f32 %v3652_v11, %v3650_v10 }
 0x4c2   : > { %3205 = vst [vmem:[%s4253_s11 + $0x18] sm:$0xff] %v1597_v12  ;;  %v1605_v13 = vpack.c.bf16 %v1597_v12, %v1597_v12 }
 0x4c4   : > { %1831 = vmatmul.mubr.bf16.vlgmr.msra.gmra.mrb[16].mxu0 %v1605_v13  ;;  %1872 = vmatmul.mubr.bf16.vlgmr.msra.gmra.mrb[16].mxu1 %v1605_v13 }
 0x4c5   : > { %2109 = vmatpush1.bf16.msra.mxu0 %v4488_v51  ;;  %2150 = vmatpush1.bf16.msra.mxu1 %v4490_v52 }
 0x4c6   : > { %2110 = vmatprep.subr.bf16.mxu0 %v4496_v53  ;;  %2151 = vmatprep.subr.bf16.mxu1 %v4498_v54 }
 0x4c7   : > { %2140 = vmatprep.mubr.bf16.mxu0 %v3987_v4  ;;  %2181 = vmatprep.mubr.bf16.mxu1 %v3987_v4 }
 0x4c9   : > { %2111 = vmatpush1.bf16.msra.mxu0 %v4500_v55  ;;  %2152 = vmatpush1.bf16.msra.mxu1 %v4502_v2 }
 0x4ca   : > { %2112 = vmatprep.subr.bf16.mxu0 %v4508_v8  ;;  %2153 = vmatprep.subr.bf16.mxu1 %v4510_v56 }
 0x4cd   : > { %2113 = vmatpush1.bf16.msra.mxu0 %v4512_v57  ;;  %2154 = vmatpush1.bf16.msra.mxu1 %v4514_v58 }
 0x4ce   : > { %2114 = vmatprep.subr.bf16.mxu0 %v4520_v59  ;;  %2155 = vmatprep.subr.bf16.mxu1 %v4522_v60 }
 0x4d1   : > { %2115 = vmatpush1.bf16.msra.mxu0 %v4524_v61  ;;  %2156 = vmatpush1.bf16.msra.mxu1 %v4526_v62 }
 0x4d2   : > { %2116 = vmatprep.subr.bf16.mxu0 %v4532_v63  ;;  %2157 = vmatprep.subr.bf16.mxu1 %v4534_v0 }
 0x4d5   : > { %2117 = vmatpush1.bf16.msra.mxu0 %v4536_v1  ;;  %2158 = vmatpush1.bf16.msra.mxu1 %v4538_v32 }
 0x4d6   : > { %2118 = vmatprep.subr.bf16.mxu0 %v4542_v35  ;;  %2159 = vmatprep.subr.bf16.mxu1 %v4550_v40 }
 0x4d9   : > { %2119 = vmatpush1.bf16.msra.mxu0 %v4546_v38  ;;  %2160 = vmatpush1.bf16.msra.mxu1 %v4548_v39 }
 0x4da   : > { %2120 = vmatprep.subr.bf16.mxu0 %v4553_v41  ;;  %2161 = vmatprep.subr.bf16.mxu1 %v4555_v42 }
 0x4dd   : > { %2121 = vmatpush1.bf16.msra.mxu0 %v4560_v43  ;;  %2162 = vmatpush1.bf16.msra.mxu1 %v4562_v44 }
 0x4de   : > { %2122 = vmatprep.subr.bf16.mxu0 %v4566_v3  ;;  %2163 = vmatprep.subr.bf16.mxu1 %v4568_v5 }
 0x4e1   : > { %2123 = vmatpush1.bf16.msra.mxu0 %v4572_v6  ;;  %2164 = vmatpush1.bf16.msra.mxu1 %v4574_v7 }
 0x4e2   : > { %2418 = vmatprep.subr.bf16.mxu0 %v4484_v49  ;;  %2459 = vmatprep.subr.bf16.mxu1 %v4486_v50 }
 0x597   : > { %v1832_v15 = vpop.f32.mrb[16].mxu0  ;;  %v1873_v16 = vpop.f32.mrb[16].mxu1 }
 0x598   : > { %v1880_v17 = vadd.f32 %v3206_v37, %v1832_v15  ;;  %v1834_v18 = vpop.f32.mrb[17].mxu0  ;;  %v1875_v19 = vpop.f32.mrb[17].mxu1  ;;  %v1882_v31 = vadd.f32 %v3208_v29, %v1873_v16 }
 0x599   : > { %v1881_v20 = vadd.f32 %v3207_v14, %v1834_v18  ;;  %v1836_v21 = vpop.f32.mrb[18].mxu0  ;;  %v1877_v22 = vpop.f32.mrb[18].mxu1  ;;  %v1883_v28 = vadd.f32 %v3209_v27, %v1875_v19  ;;  %v3247_v18 = vld [vmem:[%s4238_s10 + $0xa8] sm:$0xff] }
 0x59a   : > { %v3242_v23 = vmul.f32 -1.442695, %v1880_v17  ;;  %v1837_v24 = vpop.f32.mrb[19].mxu0  ;;  %v1878_v25 = vpop.f32.mrb[19].mxu1 }
 0x59b   : > { %v3243_v26 = vmul.f32 -1.442695, %v1881_v20  ;;  %v3244_v30 = vmul.f32 -1.442695, %v1883_v28 }
 0x59c   : > { %3653 = vpow2.f32 %v3242_v23 }
 0x59d   : > { %3655 = vpow2.f32 %v3243_v26 }
 0x59e   : > { %3657 = vpow2.f32 %v3244_v30 }
 0x59f   : > { %3659 = vtanh.f32 %v1882_v31  ;;  %v3248_v31 = vld [vmem:[%s4238_s10 + $0xb0] sm:$0xff] }
 0x5a6   : > { %v3654_v33 = vpop.eup %3653 }
 0x5a7   : > { %v3656_v34 = vpop.eup %3655  ;;  %v1887_v36 = vadd.f32 1.0, %v3654_v33 }
 0x5a8   : > { %v1893_v45 = vadd.f32 1.0, %v3656_v34  ;;  %v3658_v46 = vpop.eup %3657 }
 0x5a9   : > { %3661 = vrcp.f32 %v1887_v36  ;;  %v3660_v47 = vpop.eup %3659  ;;  %v1900_v12 = vadd.f32 1.0, %v3658_v46 }
 0x5aa   : > { %3663 = vrcp.f32 %v1893_v45 }
 0x5ab   : > { %3665 = vrcp.f32 %v1900_v12 }
 0x5b3   : > { %v3662_v48 = vpop.eup %3661 }
 0x5b4   : > { %v3664_v10 = vpop.eup %3663  ;;  %v1904_v11 = vmul.f32 %v3662_v48, %v3660_v47 }
 0x5b5   : > { %v1903_v13 = vmul.f32 %v3664_v10, %v4587_v9  ;;  %v3666_v14 = vpop.eup %3665  ;;  %v3246_v9 = vld [vmem:[%s4238_s10 + $0xa0] sm:$0xff] }
 0x5b7   : > { %v4630_v37 = vadd.f32 %v1904_v11, %v1903_v13 }
 0x5b9   : > { %3667 = vtanh.f32 %v4630_v37 }
 0x5c3   : > { %v3668_v15 = vpop.eup %3667 }
 0x5c4   : > { %v1907_v16 = vmul.f32 %v3668_v15, %v3666_v14 }
 0x5c6   : > { %3245 = vst [vmem:[%s4253_s11 + $0x20] sm:$0xff] %v1907_v16  ;;  %v1915_v17 = vpack.c.bf16 %v1907_v16, %v1907_v16 }
 0x5c8   : > { %2141 = vmatmul.mubr.bf16.vlgmr.msra.gmra.mrb[20].mxu0 %v1915_v17  ;;  %2182 = vmatmul.mubr.bf16.vlgmr.msra.gmra.mrb[20].mxu1 %v1915_v17 }
 0x5c9   : > { %2419 = vmatpush1.bf16.msra.mxu0 %v4488_v51  ;;  %2460 = vmatpush1.bf16.msra.mxu1 %v4490_v52 }
 0x5ca   : > { %2420 = vmatprep.subr.bf16.mxu0 %v4496_v53  ;;  %2461 = vmatprep.subr.bf16.mxu1 %v4498_v54 }
 0x5cb   : > { %2450 = vmatprep.mubr.bf16.mxu0 %v3987_v4  ;;  %2491 = vmatprep.mubr.bf16.mxu1 %v3987_v4 }
 0x5cd   : > { %2421 = vmatpush1.bf16.msra.mxu0 %v4500_v55  ;;  %2462 = vmatpush1.bf16.msra.mxu1 %v4502_v2 }
 0x5ce   : > { %2422 = vmatprep.subr.bf16.mxu0 %v4508_v8  ;;  %2463 = vmatprep.subr.bf16.mxu1 %v4510_v56 }
 0x5d1   : > { %2423 = vmatpush1.bf16.msra.mxu0 %v4512_v57  ;;  %2464 = vmatpush1.bf16.msra.mxu1 %v4514_v58 }
 0x5d2   : > { %2424 = vmatprep.subr.bf16.mxu0 %v4520_v59  ;;  %2465 = vmatprep.subr.bf16.mxu1 %v4522_v60 }
 0x5d5   : > { %2425 = vmatpush1.bf16.msra.mxu0 %v4524_v61  ;;  %2466 = vmatpush1.bf16.msra.mxu1 %v4526_v62 }
 0x5d6   : > { %2426 = vmatprep.subr.bf16.mxu0 %v4532_v63  ;;  %2467 = vmatprep.subr.bf16.mxu1 %v4534_v0 }
 0x5d9   : > { %2427 = vmatpush1.bf16.msra.mxu0 %v4536_v1  ;;  %2468 = vmatpush1.bf16.msra.mxu1 %v4538_v32 }
 0x5da   : > { %2428 = vmatprep.subr.bf16.mxu0 %v4542_v35  ;;  %2469 = vmatprep.subr.bf16.mxu1 %v4550_v40 }
 0x5dd   : > { %2429 = vmatpush1.bf16.msra.mxu0 %v4546_v38  ;;  %2470 = vmatpush1.bf16.msra.mxu1 %v4548_v39 }
 0x5de   : > { %2430 = vmatprep.subr.bf16.mxu0 %v4553_v41  ;;  %2471 = vmatprep.subr.bf16.mxu1 %v4555_v42 }
 0x5e1   : > { %2431 = vmatpush1.bf16.msra.mxu0 %v4560_v43  ;;  %2472 = vmatpush1.bf16.msra.mxu1 %v4562_v44 }
 0x5e2   : > { %2432 = vmatprep.subr.bf16.mxu0 %v4566_v3  ;;  %2473 = vmatprep.subr.bf16.mxu1 %v4568_v5 }
 0x5e5   : > { %2433 = vmatpush1.bf16.msra.mxu0 %v4572_v6  ;;  %2474 = vmatpush1.bf16.msra.mxu1 %v4574_v7 }
 0x5e6   : > { %2728 = vmatprep.subr.bf16.mxu0 %v4484_v49  ;;  %2769 = vmatprep.subr.bf16.mxu1 %v4486_v50  ;;  %v3249_v49 = vld [vmem:[%s4238_s10 + $0xb8] sm:$0xff] }
 0x69b   : > { %v2142_v19 = vpop.f32.mrb[20].mxu0  ;;  %v2183_v20 = vpop.f32.mrb[20].mxu1 }
 0x69c   : > { %v2190_v21 = vadd.f32 %v3246_v9, %v2142_v19  ;;  %v2144_v22 = vpop.f32.mrb[21].mxu0  ;;  %v2185_v23 = vpop.f32.mrb[21].mxu1  ;;  %v2192_v34 = vadd.f32 %v3248_v31, %v2183_v20 }
 0x69d   : > { %v2191_v24 = vadd.f32 %v3247_v18, %v2144_v22  ;;  %v2146_v25 = vpop.f32.mrb[22].mxu0  ;;  %v2187_v26 = vpop.f32.mrb[22].mxu1  ;;  %v2193_v50 = vadd.f32 %v3249_v49, %v2185_v23  ;;  %v3326_v23 = vld [vmem:[%s4238_s10 + $0xe0] sm:$0xff] }
 0x69e   : > { %v3282_v27 = vmul.f32 -1.442695, %v2190_v21  ;;  %v2147_v28 = vpop.f32.mrb[23].mxu0  ;;  %v2188_v29 = vpop.f32.mrb[23].mxu1 }
 0x69f   : > { %v3283_v30 = vmul.f32 -1.442695, %v2191_v24  ;;  %v3284_v33 = vmul.f32 -1.442695, %v2193_v50  ;;  %v3327_v24 = vld [vmem:[%s4238_s10 + $0xe8] sm:$0xff] }
 0x6a0   : > { %3669 = vpow2.f32 %v3282_v27 }
 0x6a1   : > { %3671 = vpow2.f32 %v3283_v30 }
 0x6a2   : > { %3673 = vpow2.f32 %v3284_v33 }
 0x6a3   : > { %3675 = vtanh.f32 %v2192_v34 }
 0x6aa   : > { %v3670_v36 = vpop.eup %3669 }
 0x6ab   : > { %v3672_v45 = vpop.eup %3671  ;;  %v2197_v46 = vadd.f32 1.0, %v3670_v36 }
 0x6ac   : > { %v2203_v47 = vadd.f32 1.0, %v3672_v45  ;;  %v3674_v48 = vpop.eup %3673  ;;  %v3329_v45 = vld [vmem:[%s4238_s10 + $0xf8] sm:$0xff] }
 0x6ad   : > { %3677 = vrcp.f32 %v2197_v46  ;;  %v3676_v10 = vpop.eup %3675  ;;  %v2210_v14 = vadd.f32 1.0, %v3674_v48 }
 0x6ae   : > { %3679 = vrcp.f32 %v2203_v47  ;;  %v3328_v47 = vld [vmem:[%s4238_s10 + $0xf0] sm:$0xff] }
 0x6af   : > { %3681 = vrcp.f32 %v2210_v14 }
 0x6b7   : > { %v3678_v11 = vpop.eup %3677 }
 0x6b8   : > { %v3680_v12 = vpop.eup %3679  ;;  %v2214_v13 = vmul.f32 %v3678_v11, %v3676_v10 }
 0x6b9   : > { %v2213_v15 = vmul.f32 %v3680_v12, %v4630_v37  ;;  %v3682_v17 = vpop.eup %3681 }
 0x6bb   : > { %v4673_v16 = vadd.f32 %v2214_v13, %v2213_v15 }
 0x6bd   : > { %3683 = vtanh.f32 %v4673_v16 }
 0x6c7   : > { %v3684_v9 = vpop.eup %3683 }
 0x6c8   : > { %v2217_v18 = vmul.f32 %v3684_v9, %v3682_v17 }
 0x6ca   : > { %3285 = vst [vmem:[%s4253_s11 + $0x28] sm:$0xff] %v2217_v18  ;;  %v2225_v19 = vpack.c.bf16 %v2217_v18, %v2217_v18 }
 0x6cc   : > { %2451 = vmatmul.mubr.bf16.vlgmr.msra.gmra.mrb[24].mxu0 %v2225_v19  ;;  %2492 = vmatmul.mubr.bf16.vlgmr.msra.gmra.mrb[24].mxu1 %v2225_v19 }
 0x6cd   : > { %2729 = vmatpush1.bf16.msra.mxu0 %v4488_v51  ;;  %2770 = vmatpush1.bf16.msra.mxu1 %v4490_v52  ;;  %v3287_v51 = vld [vmem:[%s4238_s10 + $0xc8] sm:$0xff] }
 0x6ce   : > { %2730 = vmatprep.subr.bf16.mxu0 %v4496_v53  ;;  %2771 = vmatprep.subr.bf16.mxu1 %v4498_v54 }
 0x6cf   : > { %2760 = vmatprep.mubr.bf16.mxu0 %v3987_v4  ;;  %2801 = vmatprep.mubr.bf16.mxu1 %v3987_v4  ;;  %v3286_v4 = vld [vmem:[%s4238_s10 + $0xc0] sm:$0xff] }
 0x6d1   : > { %2731 = vmatpush1.bf16.msra.mxu0 %v4500_v55  ;;  %2772 = vmatpush1.bf16.msra.mxu1 %v4502_v2 }
 0x6d2   : > { %2732 = vmatprep.subr.bf16.mxu0 %v4508_v8  ;;  %2773 = vmatprep.subr.bf16.mxu1 %v4510_v56 }
 0x6d5   : > { %2733 = vmatpush1.bf16.msra.mxu0 %v4512_v57  ;;  %2774 = vmatpush1.bf16.msra.mxu1 %v4514_v58 }
 0x6d6   : > { %2734 = vmatprep.subr.bf16.mxu0 %v4520_v59  ;;  %2775 = vmatprep.subr.bf16.mxu1 %v4522_v60 }
 0x6d9   : > { %2735 = vmatpush1.bf16.msra.mxu0 %v4524_v61  ;;  %2776 = vmatpush1.bf16.msra.mxu1 %v4526_v62  ;;  %v3289_v62 = vld [vmem:[%s4238_s10 + $0xd8] sm:$0xff] }
 0x6da   : > { %2736 = vmatprep.subr.bf16.mxu0 %v4532_v63  ;;  %2777 = vmatprep.subr.bf16.mxu1 %v4534_v0  ;;  %v3288_v0 = vld [vmem:[%s4238_s10 + $0xd0] sm:$0xff] }
 0x6dd   : > { %2737 = vmatpush1.bf16.msra.mxu0 %v4536_v1  ;;  %2778 = vmatpush1.bf16.msra.mxu1 %v4538_v32 }
 0x6de   : > { %2738 = vmatprep.subr.bf16.mxu0 %v4542_v35  ;;  %2779 = vmatprep.subr.bf16.mxu1 %v4550_v40 }
 0x6e1   : > { %2739 = vmatpush1.bf16.msra.mxu0 %v4546_v38  ;;  %2780 = vmatpush1.bf16.msra.mxu1 %v4548_v39 }
 0x6e2   : > { %2740 = vmatprep.subr.bf16.mxu0 %v4553_v41  ;;  %2781 = vmatprep.subr.bf16.mxu1 %v4555_v42 }
 0x6e5   : > { %2741 = vmatpush1.bf16.msra.mxu0 %v4560_v43  ;;  %2782 = vmatpush1.bf16.msra.mxu1 %v4562_v44 }
 0x6e6   : > { %2742 = vmatprep.subr.bf16.mxu0 %v4566_v3  ;;  %2783 = vmatprep.subr.bf16.mxu1 %v4568_v5 }
 0x6e9   : > { %2743 = vmatpush1.bf16.msra.mxu0 %v4572_v6  ;;  %2784 = vmatpush1.bf16.msra.mxu1 %v4574_v7 }
 0x79f   : > { %v2452_v52 = vpop.f32.mrb[24].mxu0  ;;  %v2493_v53 = vpop.f32.mrb[24].mxu1 }
 0x7a0   : > { %v2500_v54 = vadd.f32 %v3286_v4, %v2452_v52  ;;  %v2454_v55 = vpop.f32.mrb[25].mxu0  ;;  %v2495_v2 = vpop.f32.mrb[25].mxu1  ;;  %v2502_v32 = vadd.f32 %v3288_v0, %v2493_v53 }
 0x7a1   : > { %v2501_v8 = vadd.f32 %v3287_v51, %v2454_v55  ;;  %v2456_v56 = vpop.f32.mrb[26].mxu0  ;;  %v2497_v57 = vpop.f32.mrb[26].mxu1  ;;  %v2503_v63 = vadd.f32 %v3289_v62, %v2495_v2 }
 0x7a2   : > { %v3322_v58 = vmul.f32 -1.442695, %v2500_v54  ;;  %v2457_v59 = vpop.f32.mrb[27].mxu0  ;;  %v2498_v60 = vpop.f32.mrb[27].mxu1 }
 0x7a3   : > { %v3323_v61 = vmul.f32 -1.442695, %v2501_v8  ;;  %v3324_v1 = vmul.f32 -1.442695, %v2503_v63 }
 0x7a4   : > { %3685 = vpow2.f32 %v3322_v58 }
 0x7a5   : > { %3687 = vpow2.f32 %v3323_v61 }
 0x7a6   : > { %3689 = vpow2.f32 %v3324_v1 }
 0x7a7   : > { %3691 = vtanh.f32 %v2502_v32 }
 0x7ae   : > { %v3686_v35 = vpop.eup %3685 }
 0x7af   : > { %v3688_v38 = vpop.eup %3687  ;;  %v2507_v39 = vadd.f32 1.0, %v3686_v35 }
 0x7b0   : > { %v2513_v40 = vadd.f32 1.0, %v3688_v38  ;;  %v3690_v41 = vpop.eup %3689 }
 0x7b1   : > { %3693 = vrcp.f32 %v2507_v39  ;;  %v3692_v42 = vpop.eup %3691  ;;  %v2520_v5 = vadd.f32 1.0, %v3690_v41 }
 0x7b2   : > { %3695 = vrcp.f32 %v2513_v40 }
 0x7b3   : > { %3697 = vrcp.f32 %v2520_v5 }
 0x7bb   : > { %v3694_v43 = vpop.eup %3693 }
 0x7bc   : > { %v3696_v44 = vpop.eup %3695  ;;  %v2524_v3 = vmul.f32 %v3694_v43, %v3692_v42 }
 0x7bd   : > { %v2523_v6 = vmul.f32 %v3696_v44, %v4673_v16  ;;  %v3698_v37 = vpop.eup %3697 }
 0x7bf   : > { %v2525_v7 = vadd.f32 %v2524_v3, %v2523_v6 }
 0x7c1   : > { %3699 = vtanh.f32 %v2525_v7 }
 0x7cb   : > { %v3700_v20 = vpop.eup %3699 }
 0x7cc   : > { %v2527_v21 = vmul.f32 %v3700_v20, %v3698_v37 }
 0x7ce   : > { %3325 = vst [vmem:[%s4253_s11 + $0x30] sm:$0xff] %v2527_v21  ;;  %v2535_v22 = vpack.c.bf16 %v2527_v21, %v2527_v21 }
 0x7d0   : > { %2761 = vmatmul.mubr.bf16.vlgmr.msra.gmra.mrb[28].mxu0 %v2535_v22  ;;  %2802 = vmatmul.mubr.bf16.vlgmr.msra.gmra.mrb[28].mxu1 %v2535_v22 }
 0x8a3   : > { %v2762_v25 = vpop.f32.mrb[28].mxu0  ;;  %v2803_v26 = vpop.f32.mrb[28].mxu1 }
 0x8a4   : > { %v2810_v27 = vadd.f32 %v3326_v23, %v2762_v25  ;;  %v2764_v28 = vpop.f32.mrb[29].mxu0  ;;  %v2805_v29 = vpop.f32.mrb[29].mxu1  ;;  %v2812_v10 = vadd.f32 %v3328_v47, %v2803_v26 }
 0x8a5   : > { %v2811_v30 = vadd.f32 %v3327_v24, %v2764_v28  ;;  %v2766_v49 = vpop.f32.mrb[30].mxu0  ;;  %v2807_v50 = vpop.f32.mrb[30].mxu1  ;;  %v2813_v46 = vadd.f32 %v3329_v45, %v2805_v29 }
 0x8a6   : > { %v3362_v31 = vmul.f32 -1.442695, %v2810_v27  ;;  %v2767_v33 = vpop.f32.mrb[31].mxu0  ;;  %v2808_v34 = vpop.f32.mrb[31].mxu1 }
 0x8a7   : > { %v3363_v36 = vmul.f32 -1.442695, %v2811_v30  ;;  %v3364_v48 = vmul.f32 -1.442695, %v2813_v46 }
 0x8a8   : > { %3701 = vpow2.f32 %v3362_v31 }
 0x8a9   : > { %3703 = vpow2.f32 %v3363_v36 }
 0x8aa   : > { %3705 = vpow2.f32 %v3364_v48 }
 0x8ab   : > { %3707 = vtanh.f32 %v2812_v10 }
 0x8b2   : > { %v3702_v11 = vpop.eup %3701 }
 0x8b3   : > { %v3704_v12 = vpop.eup %3703  ;;  %v2817_v13 = vadd.f32 1.0, %v3702_v11 }
 0x8b4   : > { %v2823_v14 = vadd.f32 1.0, %v3704_v12  ;;  %v3706_v15 = vpop.eup %3705 }
 0x8b5   : > { %3709 = vrcp.f32 %v2817_v13  ;;  %v3708_v16 = vpop.eup %3707  ;;  %v2830_v19 = vadd.f32 1.0, %v3706_v15 }
 0x8b6   : > { %3711 = vrcp.f32 %v2823_v14 }
 0x8b7   : > { %3713 = vrcp.f32 %v2830_v19 }
 0x8bf   : > { %v3710_v17 = vpop.eup %3709 }
 0x8c0   : > { %v3712_v9 = vpop.eup %3711  ;;  %v2834_v18 = vmul.f32 %v3710_v17, %v3708_v16 }
 0x8c1   : > { %v2833_v4 = vmul.f32 %v3712_v9, %v2525_v7  ;;  %v3714_v52 = vpop.eup %3713 }
 0x8c3   : > { %v2835_v51 = vadd.f32 %v2834_v18, %v2833_v4 }
 0x8c5   : > { %3715 = vtanh.f32 %v2835_v51  ;;  %2841 = vst [vmem:[#allocation3] sm:$0xff] %v2835_v51  ;;  %2847 = vst [vmem:[#allocation15] sm:$0xff] (!%p3366_p1), %v2835_v51 }
 0x8cc   : > { %2845 = sbr.rel (%p3366_p1) target bundleno = 2260 (0x8d4), region = 60 }
 0x8cf   : > { %v3716_v53 = vpop.eup %3715 }
 0x8d0   : > { %v2837_v54 = vmul.f32 %v3716_v53, %v3714_v52 }
 0x8d2   : > { %3365 = vst [vmem:[%s4253_s11 + $0x38] sm:$0xff] %v2837_v54  ;;  %2840 = vst [vmem:[#allocation2] sm:$0xff] %v2837_v54 }
 0x8d3   : > { %2846 = vst [vmem:[#allocation13] sm:$0xff] %v2837_v54 }
 0x8d4 PF: > { %s3988_s29 = smov [#allocation13]   ;;  %s3378_s8 = sshll.u32 %s3969_s24, 10 }
 0x8d5   : > { %s2879_s7 = sshll.u32 %s3988_s29, 4  ;;  %p4844_p6 = scmp.ne.s32.totalorder %s4831_s30, 0  ;;  %s2880_s7 = int_to_ptr.vmem [resolvable:$true] %s2879_s7 }
 0x8d6   : > { %s3831_s17 = scalar_lea.vmem %s2880_s7, 128  ;;  %p3838_p5 = scmp.lt.s32.totalorder %s2880_s7, %s2880_s7 }
 0x8d7   : > { %p3832_p4 = scmp.ne.s32.totalorder %s2880_s7, %s3831_s17  ;;  %p3839_p10 = scmp.lt.s32.totalorder %s3831_s17, %s3831_s17 }
 0x8d9   : > { %p3833_p8 = pnand %p3832_p4, %p4844_p6  ;;  %p3840_p13 = por %p3839_p10, %p3838_p5 }
 0x8db   : > { %p3834_p0 = pneg %p3833_p8 }
 0x8dd   : > { %p3841_p9 = pnand %p3840_p13, %p3834_p0 }
 0x8df   : > { %3844 = shalt.err (!%p3841_p9)
}
 0x8e0   : > { %s3845_s27 = scalar_lea.hbm %s4822_s5, 128 }
 0x8e1   : > { %p3846_p3 = scmp.ne.s32.totalorder %s4822_s5, %s3845_s27  ;;  %p3851_p12 = scmp.lt.u32.totalorder %s3845_s27, %s4822_s5 }
 0x8e3   : > { %p3847_p7 = pnand %p3846_p3, %p4844_p6 }
 0x8e5   : > { %p3848_p11 = pneg %p3847_p7 }
 0x8e7   : > { %p3853_p1 = pnand %p3851_p12, %p3848_p11 }
 0x8e9   : > { %3856 = shalt.err (!%p3853_p1)
}
 0x8ea   : > { %3395 = dma.vmem_to_hbm [thread:$0]  (%p4844_p6), %s2880_s7, 128, %s4822_s5, [#allocation14]  }
 0x8eb   : > { %s4743_s18 = scalar_lea.hbm %s4821_s4, %s3378_s8  ;;  %s2863_s13 = sshll.u32 %s4253_s11, 4  ;;  %s4746_s13 = int_to_ptr.vmem [resolvable:$true] %s2863_s13 }
 0x8ec   : > { %s2849_s27 = scalar_lea.sflag [#allocation6], %s4234_s28  ;;  %s3857_s15 = scalar_lea.vmem %s4746_s13, 1024 }
 0x8ed   : > { %p3858_p4 = scmp.ne.s32.totalorder %s4746_s13, %s3857_s15  ;;  %s3989_s14 = smov [#allocation12]  }
 0x8ee   : > { %s3861_s24 = sshll.u32 %s3989_s14, 4  ;;  %s3862_s24 = int_to_ptr.vmem [resolvable:$false] %s3861_s24 }
 0x8ef   : > { %p3859_p8 = pnand %p3858_p4, %p4176_p2  ;;  %s3863_s7 = scalar_lea.vmem %s3862_s24, 2048 }
 0x8f0   : > { %p3864_p5 = scmp.lt.s32.totalorder %s4746_s13, %s3862_s24  ;;  %p3865_p10 = scmp.lt.s32.totalorder %s3863_s7, %s3857_s15 }
 0x8f1   : > { %p3860_p0 = pneg %p3859_p8 }
 0x8f2   : > { %p3866_p13 = por %p3865_p10, %p3864_p5 }
 0x8f4   : > { %p3867_p9 = pnand %p3866_p13, %p3860_p0 }
 0x8f6   : > { %3870 = shalt.err (!%p3867_p9)
}
 0x8f7   : > { %s3871_s11 = scalar_lea.hbm %s4743_s18, 1024  ;;  %s3875_s10 = scalar_lea.hbm %s4821_s4, 2048 }
 0x8f8   : > { %p3872_p3 = scmp.ne.s32.totalorder %s4743_s18, %s3871_s11  ;;  %p3876_p12 = scmp.lt.u32.totalorder %s4743_s18, %s4821_s4 }
 0x8f9   : > { %p3877_p1 = scmp.lt.u32.totalorder %s3875_s10, %s3871_s11  ;;  %p3879_p8 = scmp.lt.u32.totalorder %s3871_s11, %s4743_s18 }
 0x8fa   : > { %p3873_p7 = pnand %p3872_p3, %p4176_p2 }
 0x8fb   : > { %p3878_p4 = por %p3877_p1, %p3876_p12 }
 0x8fc   : > { %p3874_p11 = pneg %p3873_p7 }
 0x8fd   : > { %p3880_p0 = por %p3879_p8, %p3878_p4 }
 0x8ff   : > { %p3881_p5 = pnand %p3880_p0, %p3874_p11 }
 0x901   : > { %3884 = shalt.err (!%p3881_p5)
}
 0x902   : > { %s3990_s17 = smov 128   ;;  %s3991_s15 = smov 8  }
 0x903   : > { %3393 = dma.vmem_to_hbm [thread:$0]  (%p4176_p2), %s4746_s13, 1024, %s4743_s18, %s2849_s27, %s3990_s17, %s3990_s17, %s3991_s15  }
 0x904   : > { %s3992_s14 = smov [#allocation15]  }
 0x905   : > { %s2892_s24 = sshll.u32 %s3992_s14, 4  ;;  %s2893_s24 = int_to_ptr.vmem [resolvable:$true] %s2892_s24 }
 0x906   : > { %s3885_s7 = scalar_lea.vmem %s2893_s24, 128  ;;  %p3892_p3 = scmp.lt.s32.totalorder %s2893_s24, %s2893_s24 }
 0x907   : > { %p3886_p10 = scmp.ne.s32.totalorder %s2893_s24, %s3885_s7  ;;  %p3893_p7 = scmp.lt.s32.totalorder %s3885_s7, %s3885_s7 }
 0x909   : > { %p3887_p13 = pnand %p3886_p10, %p4844_p6  ;;  %p3894_p11 = por %p3893_p7, %p3892_p3 }
 0x90b   : > { %p3888_p9 = pneg %p3887_p13 }
 0x90d   : > { %p3895_p12 = pnand %p3894_p11, %p3888_p9 }
 0x90f   : > { %3898 = shalt.err (!%p3895_p12)
}
 0x910   : > { %s3899_s20 = scalar_lea.hbm %s4823_s6, 128 }
 0x911   : > { %p3900_p2 = scmp.ne.s32.totalorder %s4823_s6, %s3899_s20  ;;  %p3905_p8 = scmp.lt.u32.totalorder %s3899_s20, %s4823_s6 }
 0x913   : > { %p3901_p1 = pnand %p3900_p2, %p4844_p6 }
 0x915   : > { %p3902_p4 = pneg %p3901_p1 }
 0x917   : > { %p3907_p0 = pnand %p3905_p8, %p3902_p4 }
 0x919   : > { %3910 = shalt.err (!%p3907_p0)
}
 0x91a   : > { %3397 = dma.vmem_to_hbm [thread:$0]  (%p4844_p6), %s2893_s24, 128, %s4823_s6, [#allocation14]  }
 0x91b   : > { %3948 = dma.done.wait (%p4844_p6), [#allocation14], 256  }
 0x91c   : > { %3950 = vsyncadd (%p4844_p6), [#allocation14], 4294967040 }
 0x91d PF: > { %s4845_s9 = sld [smem:[#allocation21_spill]]  ;;  %s2912_s29 = sand.u32 1, %s3957_s21  }
 0x91e   : > { %p4847_p10 = scmp.ge.s32.totalorder %s3977_s26, 2  ;;  %s2913_s17 = scalar_lea.sflag [#allocation6], %s2912_s29 }
 0x923   : > { %p4846_p5 = scmp.ne.s32.totalorder %s4845_s9, 0 }
 0x925   : > { %p3418_p13 = pnand %p4847_p10, %p4846_p5 }
 0x927   : > { %3952 = dma.done.wait (!%p3418_p13), %s2913_s17, 1024  }
 0x928   : > { %3954 = vsyncadd (!%p3418_p13), %s2913_s17, 4294966272  ;;  %s26_s26 = sadd.s32 1, %s3977_s26   ;;  %s4848_s21 = smov %s3961_s22 }
 0x929   : > { %p23_p9 = scmp.ge.s32.totalorder %s26_s26, 4   ;;  %s4849_s22 = smov %s3965_s23 }
 0x92a   : > { %s4850_s23 = smov %s4188_s12  ;;  %s4851_s24 = smov %s3973_s25 }
 0x92b   : > { %s4852_s25 = smov %s4854_s19  ;;  %25 = sbr.rel (!%p23_p9) target bundleno = 9 (0x9), region = 135 }
 0x932   :  { %2918 = vsyncpa [#allocation5], 1 }
 0x933   :  { %2920 = vsyncpa [#allocation5 + $0x1], 1 }
 0x934   :  { %2921 = vsyncpa [#allocation8], 1 }
 0x935   :  { %2922 = vsyncpa [#allocation11], 1 }
 0x936   :  { %2923 = vsyncpa [#allocation6], 1 }
 0x937   :  { %2925 = vsyncpa [#allocation6 + $0x1], 1 }
 0x938   :  { %2926 = vsyncpa [#allocation14], 1 }

</bundles_post_ra>
